<compile_context>
chip_gen: v7x
topology: tpu7x:2x2x1
jax: 0.10.0
libtpu: 0.0.40
codegen_flags: <defaults>
</compile_context>

<pallas_src>
import functools

import jax
import jax.numpy as jnp
from jax.experimental import pallas as pl
from jax.experimental.pallas import tpu as pltpu

BN_EPS = 1e-5      # PyTorch BatchNorm1d default
NORM_EPS = 1e-12   # F.normalize default


# ----------------------------------------------------------------------------
# Fused MLP kernel: Linear -> BatchNorm1d(train) -> ReLU -> Linear
# ----------------------------------------------------------------------------
def _mlp_kernel(x_ref, w1_ref, b1_ref, gamma_ref, beta_ref, w2_ref, b2_ref,
                o_ref, acc_ref):
    k = pl.program_id(0)

    @pl.when(k == 0)
    def _init():
        acc_ref[...] = jnp.zeros_like(acc_ref)

    # ---- Linear 1 (H tile): (B, In) @ (In, TH) on the MXU, bf16 in / f32 acc
    h = jnp.dot(x_ref[...], w1_ref[...],
                preferred_element_type=jnp.float32) + b1_ref[...]

    # ---- BatchNorm1d, training-mode biased batch stats (per-feature, so the
    #      per-H-tile computation is exact).  One-pass moments + fused FMA.
    inv_n = 1.0 / h.shape[0]
    mean = jnp.sum(h, axis=0, keepdims=True) * inv_n
    mean_sq = jnp.sum(h * h, axis=0, keepdims=True) * inv_n
    var = jnp.maximum(mean_sq - mean * mean, 0.0)
    inv_std = jax.lax.rsqrt(var + BN_EPS)                 # EUP slot
    scale = gamma_ref[...] * inv_std
    shift = beta_ref[...] - mean * scale
    h = jnp.maximum(h * scale + shift, 0.0)               # fused BN affine + ReLU

    # ---- Linear 2 partial product: (B, TH) @ (TH, Out), f32 accumulation
    acc_ref[...] += jnp.dot(h.astype(jnp.bfloat16), w2_ref[...],
                            preferred_element_type=jnp.float32)

    @pl.when(k == pl.num_programs(0) - 1)
    def _finalize():
        o_ref[...] = (acc_ref[...] + b2_ref[...]).astype(o_ref.dtype)


def mlp_forward(x, w1, b1, gamma, beta, w2, b2, *, block_h=512):
    """Fused MLP.  x:(B,In); w1:(In,H); b1/gamma/beta:(1,H); w2:(H,Out); b2:(1,Out).

    Weights are stored pre-transposed so the kernel computes x @ W + b
    (equivalent to PyTorch's x @ W.T + b).
    """
    B, In = x.shape
    H, Out = w2.shape
    assert w1.shape == (In, H) and b1.shape == (1, H) and b2.shape == (1, Out)

    # Pick the H-tile: multiple of 128 lanes (or the full H) that divides H.
    th = min(block_h, H)
    if H % th != 0 or (th % 128 != 0 and th != H):
        th = H
    grid_k = H // th

    # bf16 MXU operands: halves weight-streaming bytes from HBM, native MXU rate.
    x_bf = x.astype(jnp.bfloat16)
    w1_bf = w1.astype(jnp.bfloat16)
    w2_bf = w2.astype(jnp.bfloat16)

    flops = 2 * B * (In * H + H * Out)
    bytes_accessed = (
        2 * (x_bf.size + w1_bf.size + w2_bf.size)               # bf16 streams
        + 4 * (b1.size + gamma.size + beta.size + b2.size + B * Out)
    )

    grid_spec = pltpu.PrefetchScalarGridSpec(
        num_scalar_prefetch=0,
        grid=(grid_k,),
        in_specs=[
            pl.BlockSpec((B, In), lambda k: (0, 0)),     # x: resident
            pl.BlockSpec((In, th), lambda k: (0, k)),    # W1 slab: streamed
            pl.BlockSpec((1, th), lambda k: (0, k)),     # b1 slab
            pl.BlockSpec((1, th), lambda k: (0, k)),     # gamma slab
            pl.BlockSpec((1, th), lambda k: (0, k)),     # beta slab
            pl.BlockSpec((th, Out), lambda k: (k, 0)),   # W2 slab: streamed
            pl.BlockSpec((1, Out), lambda k: (0, 0)),    # b2: resident
        ],
        out_specs=pl.BlockSpec((B, Out), lambda k: (0, 0)),
        scratch_shapes=[pltpu.VMEM((B, Out), jnp.float32)],
    )

    return pl.pallas_call(
        _mlp_kernel,
        out_shape=jax.ShapeDtypeStruct((B, Out), jnp.float32),
        grid_spec=grid_spec,
        compiler_params=pltpu.CompilerParams(
            dimension_semantics=("arbitrary",),   # H is the Linear-2 reduction axis
            vmem_limit_bytes=64 * 1024 * 1024,    # <= physical VMEM on v5e/v6e/v7x
        ),
        cost_estimate=pl.CostEstimate(
            flops=flops, transcendentals=H, bytes_accessed=bytes_accessed),
    )(x_bf, w1_bf, b1, gamma, beta, w2_bf, b2)


# ----------------------------------------------------------------------------
# BYOL regression loss kernel: 2 - 2 * <normalize(p), normalize(z)>
# ----------------------------------------------------------------------------
def _byol_loss_kernel(p_ref, z_ref, o_ref):
    p = p_ref[...]
    z = z_ref[...]
    p = p * jax.lax.rsqrt(jnp.sum(p * p, axis=-1, keepdims=True) + NORM_EPS)
    z = z * jax.lax.rsqrt(jnp.sum(z * z, axis=-1, keepdims=True) + NORM_EPS)
    o_ref[...] = 2.0 - 2.0 * jnp.sum(p * z, axis=-1, keepdims=True)


def byol_loss(p, z):
    B = p.shape[0]
    out = pl.pallas_call(
        _byol_loss_kernel,
        out_shape=jax.ShapeDtypeStruct((B, 1), jnp.float32),
        in_specs=[pl.BlockSpec(memory_space=pltpu.VMEM)] * 2,
        out_specs=pl.BlockSpec(memory_space=pltpu.VMEM),
    )(p, z)
    return out[:, 0]


# ----------------------------------------------------------------------------
# BYOL forward over backbone features (projector / predictor / target / loss)
# ----------------------------------------------------------------------------
def byol_forward(feat1, feat2, proj_params, target_params, pred_params, *,
                 block_h=512):
    mlp = functools.partial(mlp_forward, block_h=block_h)
    z1 = mlp(feat1, *proj_params)
    z2 = mlp(feat2, *proj_params)
    p1 = mlp(z1, *pred_params)
    p2 = mlp(z2, *pred_params)
    zt1 = mlp(feat1, *target_params)   # target encoder (deepcopy of online at init)
    zt2 = mlp(feat2, *target_params)
    return jnp.mean(byol_loss(p1, zt2) + byol_loss(p2, zt1))


# ----------------------------------------------------------------------------
# Pure-JAX references
# ----------------------------------------------------------------------------
def mlp_reference_f32(x, w1, b1, gamma, beta, w2, b2):
    """Module semantics in f32 (PyTorch Linear->BN(train)->ReLU->Linear)."""
    h = x @ w1 + b1
    mean = jnp.mean(h, axis=0, keepdims=True)
    var = jnp.mean((h - mean) ** 2, axis=0, keepdims=True)
    h = (h - mean) / jnp.sqrt(var + BN_EPS) * gamma + beta
    h = jnp.maximum(h, 0.0)
    return h @ w2 + b2


def mlp_reference_bf16(x, w1, b1, gamma, beta, w2, b2):
    """Mirror of the kernel's dtype/math choices (bf16 MXU, one-pass moments)."""
    h = jnp.dot(x.astype(jnp.bfloat16), w1.astype(jnp.bfloat16),
                preferred_element_type=jnp.float32) + b1
    inv_n = 1.0 / h.shape[0]
    mean = jnp.sum(h, axis=0, keepdims=True) * inv_n
    var = jnp.maximum(jnp.sum(h * h, axis=0, keepdims=True) * inv_n - mean * mean, 0.0)
    inv_std = jax.lax.rsqrt(var + BN_EPS)
    scale = gamma * inv_std
    h = jnp.maximum(h * scale + (beta - mean * scale), 0.0)
    return jnp.dot(h.astype(jnp.bfloat16), w2.astype(jnp.bfloat16),
                   preferred_element_type=jnp.float32) + b2


def loss_reference(p, z):
    pn = p / jnp.maximum(jnp.linalg.norm(p, axis=-1, keepdims=True), NORM_EPS)
    zn = z / jnp.maximum(jnp.linalg.norm(z, axis=-1, keepdims=True), NORM_EPS)
    return 2.0 - 2.0 * jnp.sum(pn * zn, axis=-1)


def byol_reference(feat1, feat2, proj_params, target_params, pred_params):
    z1 = mlp_reference_f32(feat1, *proj_params)
    z2 = mlp_reference_f32(feat2, *proj_params)
    p1 = mlp_reference_f32(z1, *pred_params)
    p2 = mlp_reference_f32(z2, *pred_params)
    zt1 = mlp_reference_f32(feat1, *target_params)
    zt2 = mlp_reference_f32(feat2, *target_params)
    return jnp.mean(loss_reference(p1, zt2) + loss_reference(p2, zt1))


if __name__ == "__main__":
    # Small shapes consistent with the module: backbone features -> projector
    # (proj_in -> hidden -> proj_out) -> predictor (proj_out -> hidden -> proj_out).
    # B = 64 keeps the MXU M-dimension reasonably filled while staying small.
    batch, proj_in, hidden, proj_out = 64, 256, 512, 256
    block_h = 256   # 2 H-tiles -> exercises the weight-streaming pipeline

    key = jax.random.PRNGKey(0)
    k_f1, k_f2, k_proj, k_pred = jax.random.split(key, 4)

    def init_mlp(k, fan_in, h, fan_out):
        k1, k2, k3, k4 = jax.random.split(k, 4)
        lim1 = 1.0 / fan_in ** 0.5
        lim2 = 1.0 / h ** 0.5
        w1 = jax.random.uniform(k1, (fan_in, h), jnp.float32, -lim1, lim1)
        b1 = jax.random.uniform(k2, (1, h), jnp.float32, -lim1, lim1)
        gamma = jnp.ones((1, h), jnp.float32)   # BatchNorm1d weight init
        beta = jnp.zeros((1, h), jnp.float32)   # BatchNorm1d bias init
        w2 = jax.random.uniform(k3, (h, fan_out), jnp.float32, -lim2, lim2)
        b2 = jax.random.uniform(k4, (1, fan_out), jnp.float32, -lim2, lim2)
        return (w1, b1, gamma, beta, w2, b2)

    feat1 = jax.random.normal(k_f1, (batch, proj_in), jnp.float32)
    feat2 = jax.random.normal(k_f2, (batch, proj_in), jnp.float32)

    proj_params = init_mlp(k_proj, proj_in, hidden, proj_out)
    target_params = tuple(jnp.array(p) for p in proj_params)   # deepcopy at init
    pred_params = init_mlp(k_pred, proj_out, hidden, proj_out)

    # --- fused MLP kernel correctness ---
    z1 = jax.block_until_ready(mlp_forward(feat1, *proj_params, block_h=block_h))
    assert z1.shape == (batch, proj_out)
    ref_bf = mlp_reference_bf16(feat1, *proj_params)   # apples-to-apples (bf16 MXU)
    ref_f32 = mlp_reference_f32(feat1, *proj_params)   # module semantics
    assert jnp.allclose(z1, ref_bf, atol=1e-3, rtol=1e-3), "mismatch vs bf16 reference"
    assert jnp.allclose(z1, ref_f32, atol=2e-2, rtol=2e-2), "mismatch vs f32 reference"

    # --- full translatable BYOL forward (projector/predictor/target + loss) ---
    loss = jax.block_until_ready(
        byol_forward(feat1, feat2, proj_params, target_params, pred_params,
                     block_h=block_h))
    loss_ref = byol_reference(feat1, feat2, proj_params, target_params, pred_params)
    assert loss.shape == ()
    assert jnp.allclose(loss, loss_ref, atol=5e-2, rtol=5e-2), "loss mismatch"

    print("KERNEL_OK")
</pallas_src>

<mosaic_0001>
module attributes {stable_mosaic.version = 11 : i64} {
  func.func @_mlp_kernel(%arg0: i32, %arg1: memref<64x256xbf16, #tpu.memory_space<vmem>>, %arg2: memref<256x256xbf16, #tpu.memory_space<vmem>>, %arg3: memref<1x256xf32, #tpu.memory_space<vmem>>, %arg4: memref<1x256xf32, #tpu.memory_space<vmem>>, %arg5: memref<1x256xf32, #tpu.memory_space<vmem>>, %arg6: memref<256x256xbf16, #tpu.memory_space<vmem>>, %arg7: memref<1x256xf32, #tpu.memory_space<vmem>>, %arg8: memref<64x256xf32, #tpu.memory_space<vmem>>, %arg9: memref<64x256xf32, #tpu.memory_space<vmem>>) attributes {dimension_semantics = [#tpu.dimension_semantics<arbitrary>], iteration_bounds = array<i64: 2>, scalar_prefetch = 0 : i64, scratch_operands = 1 : i64, tpu.core_type = #tpu.core_type<tc>, window_params = [{pipeline_mode = #tpu.pipeline_mode<synchronous>, transform_indices = @transform_0, window_bounds = array<i64: 64, 256>}, {transform_indices = @transform_1, window_bounds = array<i64: 256, 256>}, {transform_indices = @transform_2, window_bounds = array<i64: 1, 256>}, {transform_indices = @transform_3, window_bounds = array<i64: 1, 256>}, {transform_indices = @transform_4, window_bounds = array<i64: 1, 256>}, {transform_indices = @transform_5, window_bounds = array<i64: 256, 256>}, {pipeline_mode = #tpu.pipeline_mode<synchronous>, transform_indices = @transform_6, window_bounds = array<i64: 1, 256>}, {pipeline_mode = #tpu.pipeline_mode<synchronous>, transform_indices = @transform_7, window_bounds = array<i64: 64, 256>}]} {
    %c0_i32 = arith.constant 0 : i32
    %0 = arith.cmpi eq, %arg0, %c0_i32 : i32
    %1 = arith.extui %0 : i1 to i32
    %c0_i32_0 = arith.constant 0 : i32
    %2 = arith.cmpi ne, %1, %c0_i32_0 : i32
    scf.if %2 {
      %cst_25 = arith.constant 0.000000e+00 : f32
      %45 = vector.broadcast %cst_25 : f32 to vector<64x256xf32>
      %c0_26 = arith.constant 0 : index
      %c0_27 = arith.constant 0 : index
      %46 = vector.load %arg9[%c0_26, %c0_27] : memref<64x256xf32, #tpu.memory_space<vmem>>, vector<64x256xf32>
      tpu.vector_store %arg9[%c0_26, %c0_27], %45 {strides = array<i32>} : memref<64x256xf32, #tpu.memory_space<vmem>>, vector<64x256xf32>,
    } else {
    }
    %c0 = arith.constant 0 : index
    %c0_1 = arith.constant 0 : index
    %3 = vector.load %arg1[%c0, %c0_1] : memref<64x256xbf16, #tpu.memory_space<vmem>>, vector<64x256xbf16>
    %c0_2 = arith.constant 0 : index
    %c0_3 = arith.constant 0 : index
    %4 = vector.load %arg2[%c0_2, %c0_3] : memref<256x256xbf16, #tpu.memory_space<vmem>>, vector<256x256xbf16>
    %cst = arith.constant dense<0.000000e+00> : vector<64x256xf32>
    %5 = tpu.matmul %3, %4, %cst {dimension_numbers = #tpu.dot_dimension_numbers<[1], [0], [0], [1], [0, 0, 1, 1], [], []>} : vector<64x256xbf16>, vector<256x256xbf16>, vector<64x256xf32> -> vector<64x256xf32>
    %c0_4 = arith.constant 0 : index
    %c0_5 = arith.constant 0 : index
    %6 = vector.load %arg3[%c0_4, %c0_5] : memref<1x256xf32, #tpu.memory_space<vmem>>, vector<1x256xf32>
    %7 = vector.broadcast %6 : vector<1x256xf32> to vector<64x256xf32>
    %8 = arith.addf %5, %7 : vector<64x256xf32>
    %cst_6 = arith.constant dense<0.000000e+00> : vector<256xf32>
    %9 = vector.multi_reduction <add>, %8, %cst_6 [0] : vector<64x256xf32> to vector<256xf32>
    %10 = vector.shape_cast %9 : vector<256xf32> to vector<1x256xf32>
    %cst_7 = arith.constant 1.562500e-02 : f32
    %11 = vector.broadcast %cst_7 : f32 to vector<1x256xf32>
    %12 = arith.mulf %10, %11 : vector<1x256xf32>
    %13 = arith.mulf %8, %8 : vector<64x256xf32>
    %cst_8 = arith.constant dense<0.000000e+00> : vector<256xf32>
    %14 = vector.multi_reduction <add>, %13, %cst_8 [0] : vector<64x256xf32> to vector<256xf32>
    %15 = vector.shape_cast %14 : vector<256xf32> to vector<1x256xf32>
    %cst_9 = arith.constant 1.562500e-02 : f32
    %16 = vector.broadcast %cst_9 : f32 to vector<1x256xf32>
    %17 = arith.mulf %15, %16 : vector<1x256xf32>
    %18 = arith.mulf %12, %12 : vector<1x256xf32>
    %19 = arith.subf %17, %18 : vector<1x256xf32>
    %cst_10 = arith.constant 0.000000e+00 : f32
    %20 = vector.broadcast %cst_10 : f32 to vector<1x256xf32>
    %21 = arith.maximumf %19, %20 : vector<1x256xf32>
    %cst_11 = arith.constant 9.99999974E-6 : f32
    %22 = vector.broadcast %cst_11 : f32 to vector<1x256xf32>
    %23 = arith.addf %21, %22 : vector<1x256xf32>
    %24 = math.rsqrt %23 : vector<1x256xf32>
    %c0_12 = arith.constant 0 : index
    %c0_13 = arith.constant 0 : index
    %25 = vector.load %arg4[%c0_12, %c0_13] : memref<1x256xf32, #tpu.memory_space<vmem>>, vector<1x256xf32>
    %26 = arith.mulf %25, %24 : vector<1x256xf32>
    %c0_14 = arith.constant 0 : index
    %c0_15 = arith.constant 0 : index
    %27 = vector.load %arg5[%c0_14, %c0_15] : memref<1x256xf32, #tpu.memory_space<vmem>>, vector<1x256xf32>
    %28 = arith.mulf %12, %26 : vector<1x256xf32>
    %29 = arith.subf %27, %28 : vector<1x256xf32>
    %30 = vector.broadcast %26 : vector<1x256xf32> to vector<64x256xf32>
    %31 = arith.mulf %8, %30 : vector<64x256xf32>
    %32 = vector.broadcast %29 : vector<1x256xf32> to vector<64x256xf32>
    %33 = arith.addf %31, %32 : vector<64x256xf32>
    %cst_16 = arith.constant 0.000000e+00 : f32
    %34 = vector.broadcast %cst_16 : f32 to vector<64x256xf32>
    %35 = arith.maximumf %33, %34 : vector<64x256xf32>
    %c0_17 = arith.constant 0 : index
    %c0_18 = arith.constant 0 : index
    %36 = vector.load %arg9[%c0_17, %c0_18] : memref<64x256xf32, #tpu.memory_space<vmem>>, vector<64x256xf32>
    %37 = arith.truncf %35 : vector<64x256xf32> to vector<64x256xbf16>
    %c0_19 = arith.constant 0 : index
    %c0_20 = arith.constant 0 : index
    %38 = vector.load %arg6[%c0_19, %c0_20] : memref<256x256xbf16, #tpu.memory_space<vmem>>, vector<256x256xbf16>
    %cst_21 = arith.constant dense<0.000000e+00> : vector<64x256xf32>
    %39 = tpu.matmul %37, %38, %cst_21 {dimension_numbers = #tpu.dot_dimension_numbers<[1], [0], [0], [1], [0, 0, 1, 1], [], []>} : vector<64x256xbf16>, vector<256x256xbf16>, vector<64x256xf32> -> vector<64x256xf32>
    %40 = arith.addf %36, %39 : vector<64x256xf32>
    %c0_22 = arith.constant 0 : index
    %c0_23 = arith.constant 0 : index
    %41 = vector.load %arg9[%c0_22, %c0_23] : memref<64x256xf32, #tpu.memory_space<vmem>>, vector<64x256xf32>
    tpu.vector_store %arg9[%c0_22, %c0_23], %40 {strides = array<i32>} : memref<64x256xf32, #tpu.memory_space<vmem>>, vector<64x256xf32>,
    %c1_i32 = arith.constant 1 : i32
    %42 = arith.cmpi eq, %arg0, %c1_i32 : i32
    %43 = arith.extui %42 : i1 to i32
    %c0_i32_24 = arith.constant 0 : i32
    %44 = arith.cmpi ne, %43, %c0_i32_24 : i32
    scf.if %44 {
      %c0_25 = arith.constant 0 : index
      %c0_26 = arith.constant 0 : index
      %45 = vector.load %arg9[%c0_25, %c0_26] : memref<64x256xf32, #tpu.memory_space<vmem>>, vector<64x256xf32>
      %c0_27 = arith.constant 0 : index
      %c0_28 = arith.constant 0 : index
      %46 = vector.load %arg7[%c0_27, %c0_28] : memref<1x256xf32, #tpu.memory_space<vmem>>, vector<1x256xf32>
      %47 = vector.broadcast %46 : vector<1x256xf32> to vector<64x256xf32>
      %48 = arith.addf %45, %47 : vector<64x256xf32>
      %c0_29 = arith.constant 0 : index
      %c0_30 = arith.constant 0 : index
      %49 = vector.load %arg8[%c0_29, %c0_30] : memref<64x256xf32, #tpu.memory_space<vmem>>, vector<64x256xf32>
      tpu.vector_store %arg8[%c0_29, %c0_30], %48 {strides = array<i32>} : memref<64x256xf32, #tpu.memory_space<vmem>>, vector<64x256xf32>,
    } else {
    }
    return
  }
  func.func @transform_0(%arg0: i32) -> (i32, i32) {
    %c0_i32 = arith.constant 0 : i32
    %c0_i32_0 = arith.constant 0 : i32
    %c0_i32_1 = arith.constant 0 : i32
    return %c0_i32, %c0_i32_0 : i32, i32
  }
  func.func @transform_1(%arg0: i32) -> (i32, i32) {
    %c0_i32 = arith.constant 0 : i32
    %c0_i32_0 = arith.constant 0 : i32
    return %c0_i32, %arg0 : i32, i32
  }
  func.func @transform_2(%arg0: i32) -> (i32, i32) {
    %c0_i32 = arith.constant 0 : i32
    %c0_i32_0 = arith.constant 0 : i32
    return %c0_i32, %arg0 : i32, i32
  }
  func.func @transform_3(%arg0: i32) -> (i32, i32) {
    %c0_i32 = arith.constant 0 : i32
    %c0_i32_0 = arith.constant 0 : i32
    return %c0_i32, %arg0 : i32, i32
  }
  func.func @transform_4(%arg0: i32) -> (i32, i32) {
    %c0_i32 = arith.constant 0 : i32
    %c0_i32_0 = arith.constant 0 : i32
    return %c0_i32, %arg0 : i32, i32
  }
  func.func @transform_5(%arg0: i32) -> (i32, i32) {
    %c0_i32 = arith.constant 0 : i32
    %c0_i32_0 = arith.constant 0 : i32
    return %arg0, %c0_i32 : i32, i32
  }
  func.func @transform_6(%arg0: i32) -> (i32, i32) {
    %c0_i32 = arith.constant 0 : i32
    %c0_i32_0 = arith.constant 0 : i32
    %c0_i32_1 = arith.constant 0 : i32
    return %c0_i32, %c0_i32_0 : i32, i32
  }
  func.func @transform_7(%arg0: i32) -> (i32, i32) {
    %c0_i32 = arith.constant 0 : i32
    %c0_i32_0 = arith.constant 0 : i32
    %c0_i32_1 = arith.constant 0 : i32
    return %c0_i32, %c0_i32_0 : i32, i32
  }
}

</mosaic_0001>

<bundles_post_ra>
// kernel: tpu_custom_call.1
= control target key start
LH: loop header
LB: loop body
LE: loop exit
PB: predicated region body
PF: predicated region fallthrough
CT: control target
= control target key end

     0   :  { %s2765_s0 = inlined_call_operand.hbm [shape: bf16[64,256], index: 0, kind: input, shape index: {}]   ;;  %s2766_s1 = inlined_call_operand.hbm [shape: bf16[256,512], index: 1, kind: input, shape index: {}]   ;;  %s2767_s2 = inlined_call_operand.hbm [shape: f32[1,512], index: 2, kind: input, shape index: {}]   ;;  %s2768_s3 = inlined_call_operand.hbm [shape: f32[1,512], index: 3, kind: input, shape index: {}]   ;;  %s2769_s4 = inlined_call_operand.hbm [shape: f32[1,512], index: 4, kind: input, shape index: {}]   ;;  %s2770_s5 = inlined_call_operand.hbm [shape: bf16[512,256], index: 5, kind: input, shape index: {}]   ;;  %s2771_s6 = inlined_call_operand.hbm [shape: f32[1,256], index: 6, kind: input, shape index: {}]   ;;  %s2772_s7 = inlined_call_operand.hbm [shape: f32[64,256], index: 7, kind: output, shape index: {}]  }
   0x1   :  { %2789 = sst [smem:[#allocation25_spill]] %s2766_s1 }
   0x2   :  { %2790 = sst [smem:[#allocation26_spill]] %s2771_s6 }
   0x3   :  { %12 = vsyncpa [#allocation4], 0 }
   0x4   :  { %13 = vsyncpa [#allocation7], 0 }
   0x5   :  { %15 = vsyncpa [#allocation7 + $0x1], 0 }
   0x6   :  { %16 = vsyncpa [#allocation10], 0 }
   0x7   :  { %18 = vsyncpa [#allocation10 + $0x1], 0 }
   0x8   :  { %19 = vsyncpa [#allocation13], 0 }
   0x9   :  { %21 = vsyncpa [#allocation13 + $0x1], 0 }
   0xa   :  { %22 = vsyncpa [#allocation5], 0  ;;  %s2218_s24 = smov 0   ;;  %s2220_s25 = smov 0  }
   0xb   :  { %s2222_s26 = smov 0   ;;  %s2224_s27 = smov 0  }
   0xc LB: > { %2791 = sst [smem:[#allocation22_spill]] %s2157_s26  ;;  %s2237_s28 = sadd.s32 4294967295, %s2161_s27   ;;  %s2161_s27 = sphi %s2224_s27, %s2818_s27   ;;  %s2157_s26 = sphi %s2222_s26, %s2820_s26   ;;  %s2153_s25 = sphi %s2220_s25, %s2822_s25   ;;  %s2149_s24 = sphi %s2218_s24, %s2821_s24  }
   0xd   : > { %s2240_s29 = sadd.s32 1, %s2161_s27   ;;  %s56_s8 = sadd.s32 1, %s2157_s26 }
   0xe   : > { %2792 = sst [smem:[#allocation23_spill]] %s2240_s29  ;;  %s53_s30 = ssub.s32 %s2161_s27, %s2240_s29 }
   0xf   : > { %p54_p0 = scmp.eq.s32.totalorder %s53_s30, 0  ;;  %p63_p1 = scmp.ne.s32.totalorder %s2157_s26, %s2153_s25 }
  0x10   : > { %p64_p2 = scmp.eq.s32.totalorder %s2161_s27, 0  ;;  %p69_p3 = scmp.ne.s32.totalorder %s2153_s25, %s2149_s24 }
  0x11   : > { %s2250_s9 = scalar_select %p54_p0, %s2157_s26, %s56_s8  }
  0x12   : > { %p2252_p4 = por %p64_p2, %p63_p1  ;;  %p2773_p5 = scmp.eq.s32.totalorder %s2237_s28, 0 }
  0x13   : > { %2793 = sst [smem:[#allocation24_spill]] %s2250_s9  ;;  %p1557_p6 = scmp.ge.s32.totalorder %s2161_s27, 1 }
  0x14   : > { %p226_p7 = scmp.lt.s32.totalorder %s2161_s27, 3  ;;  %p2261_p8 = por %p2773_p5, %p69_p3 }
  0x15   : > { %s2163_s13 = smov [#allocation14]   ;;  %p1716_p12 = scmp.lt.s32.totalorder %s2161_s27, 2 }
  0x16   : > { %s2795_s11 = scalar_select %p2261_p8, 1, 0 }
  0x17   : > { %p2266_p10 = pnand %p1557_p6, %p226_p7  ;;  %s252_s14 = sshll.u32 %s2163_s13, 4  ;;  %s253_s14 = int_to_ptr.vmem [resolvable:$true] %s252_s14 }
  0x18   : > { %p2281_p0 = pnand %p1716_p12, %p2252_p4  ;;  %s2286_s17 = sand.u32 1, %s2161_s27  }
  0x19   : > { %s2796_s12 = scalar_select %p2266_p10, 1, 0 }
  0x1a   : > { %p1691_p11 = pneg %p2266_p10  ;;  %s2799_s6 = sld [smem:[#allocation26_spill]] }
  0x1b   : > { %s2798_s16 = scalar_select %p2281_p0, 1, 0 }
  0x1c   : > { %p2275_p13 = pnand %p1691_p11, %p2773_p5 }
  0x1e   : > { %s2797_s15 = scalar_select %p2275_p13, 1, 0 }
  0x1f   : > { %p2777_p2 = pneg %p2275_p13 }
  0x20   : > { %s1875_s20 = scalar_lea.hbm %s2799_s6, 32 }
  0x21   : > { %p1876_p1 = scmp.ne.s32.totalorder %s2799_s6, %s1875_s20  ;;  %p1882_p4 = scmp.lt.u32.totalorder %s1875_s20, %s2799_s6 }
  0x23   : > { %p1878_p3 = pnand %p2777_p2, %p1876_p1 }
  0x25   : > { %p1879_p6 = pneg %p1878_p3 }
  0x27   : > { %p1884_p7 = pnand %p1882_p4, %p1879_p6 }
  0x29   : > { %1887 = shalt.err (!%p1884_p7)
}
  0x2a   : > { %s1888_s30 = scalar_lea.vmem %s253_s14, 32  ;;  %p1896_p5 = scmp.lt.s32.totalorder %s253_s14, %s253_s14 }
  0x2b   : > { %p1889_p11 = scmp.ne.s32.totalorder %s253_s14, %s1888_s30  ;;  %p1897_p8 = scmp.lt.s32.totalorder %s1888_s30, %s1888_s30 }
  0x2d   : > { %p1891_p12 = pnand %p1889_p11, %p2777_p2  ;;  %p1898_p10 = por %p1897_p8, %p1896_p5 }
  0x2f   : > { %p1892_p9 = pneg %p1891_p12 }
  0x31   : > { %p1899_p0 = pnand %p1898_p10, %p1892_p9 }
  0x33   : > { %1902 = shalt.err (!%p1899_p0)
}
  0x34   : > { %1697 = dma.hbm_to_vmem [thread:$0]  (!%p2275_p13), %s2799_s6, 32, %s253_s14, [#allocation13]  }
  0x35   : > { %s265_s13 = sand.u32 1, %s2157_s26   ;;  %s1663_s19 = sshll.u32 %s2161_s27, 7 }
  0x36   : > { %s2311_s18 = sshll.u32 %s265_s13, 8  ;;  %s2800_s1 = sld [smem:[#allocation25_spill]] }
  0x37   : > { %s267_s23 = scalar_lea.vmem [#allocation6], %s2311_s18  ;;  %s2322_s30 = sshll.u32 %s265_s13, 1 }
  0x38   : > { %s274_s24 = sshll.u32 %s267_s23, 4  ;;  %s2783_s14 = scalar_lea.sflag [#allocation7], %s2286_s17  ;;  %s2320_s24 = int_to_ptr.vmem [resolvable:$true] %s274_s24 }
  0x39   : > { %p2801_p8 = scmp.ne.s32.totalorder %s2798_s16, 0 }
  0x3b   : > { %p2329_p9 = pneg %p2801_p8 }
  0x3c   : > { %s2317_s22 = scalar_lea.hbm %s2800_s1, %s1663_s19  ;;  %s1908_s21 = scalar_lea.hbm %s2800_s1, 8192 }
  0x3d   : > { %s1903_s8 = scalar_lea.hbm %s2317_s22, 4096  ;;  %p1909_p1 = scmp.lt.u32.totalorder %s2317_s22, %s2800_s1 }
  0x3e   : > { %p1904_p5 = scmp.ne.s32.totalorder %s2317_s22, %s1903_s8  ;;  %p1910_p3 = scmp.lt.u32.totalorder %s1908_s21, %s1903_s8 }
  0x3f   : > { %s2802_s10 = scalar_select %p2329_p9, 1, 0 }
  0x40   : > { %p1906_p10 = pnand %p2329_p9, %p1904_p5  ;;  %p1911_p6 = por %p1910_p3, %p1909_p1 }
  0x41   : > { %p1912_p4 = scmp.lt.u32.totalorder %s1903_s8, %s2317_s22 }
  0x42   : > { %p1907_p0 = pneg %p1906_p10 }
  0x43   : > { %p1913_p7 = por %p1912_p4, %p1911_p6 }
  0x45   : > { %p1914_p11 = pnand %p1913_p7, %p1907_p0 }
  0x47   : > { %1917 = shalt.err (!%p1914_p11)
}
  0x48   : > { %s1918_s13 = scalar_lea.vmem %s2320_s24, 4096  ;;  %s2164_s19 = smov [#allocation6]  }
  0x49   : > { %p1919_p12 = scmp.ne.s32.totalorder %s2320_s24, %s1918_s13  ;;  %s1923_s20 = sshll.u32 %s2164_s19, 4  ;;  %s1924_s20 = int_to_ptr.vmem [resolvable:$false] %s1923_s20 }
  0x4a   : > { %s1925_s6 = scalar_lea.vmem %s1924_s20, 8192  ;;  %p1926_p2 = scmp.lt.s32.totalorder %s2320_s24, %s1924_s20 }
  0x4b   : > { %p1921_p5 = pnand %p1919_p12, %p2329_p9  ;;  %p1927_p13 = scmp.lt.s32.totalorder %s1925_s6, %s1918_s13 }
  0x4d   : > { %p1922_p10 = pneg %p1921_p5  ;;  %p1928_p1 = por %p1927_p13, %p1926_p2 }
  0x4f   : > { %p1929_p3 = pnand %p1928_p1, %p1922_p10 }
  0x51   : > { %1932 = shalt.err (!%p1929_p3)
}
  0x52   : > { %s2165_s8 = smov 256   ;;  %s2784_s21 = smov 128  }
  0x53   : > { %s2167_s23 = smov 8   ;;  %s2357_s13 = sshll.u32 %s2161_s27, 5 }
  0x54   : > { %1701 = dma.hbm_to_vmem [thread:$0]  (!%p2801_p8), %s2317_s22, 4096, %s2320_s24, %s2783_s14, %s2165_s8, %s2784_s21, %s2167_s23  }
  0x55   : > { %s2363_s6 = scalar_lea.hbm %s2768_s3, %s2357_s13  ;;  %s307_s1 = scalar_lea.vmem [#allocation9], %s2322_s30 }
  0x56   : > { %s315_s9 = sshll.u32 %s307_s1, 4  ;;  %s2168_s26 = smov [#allocation3]   ;;  %s2366_s9 = int_to_ptr.vmem [resolvable:$true] %s315_s9 }
  0x57   : > { %s2368_s29 = sshll.u32 %s2168_s26, 4  ;;  %s304_s22 = scalar_lea.sflag [#allocation10], %s2286_s17  ;;  %s239_s29 = int_to_ptr.vmem [resolvable:$true] %s2368_s29 }
  0x58   : > { %s1933_s24 = scalar_lea.hbm %s2363_s6, 32  ;;  %s1938_s20 = scalar_lea.hbm %s2768_s3, 64 }
  0x59   : > { %p1934_p13 = scmp.ne.s32.totalorder %s2363_s6, %s1933_s24  ;;  %p1939_p6 = scmp.lt.u32.totalorder %s2363_s6, %s2768_s3 }
  0x5a   : > { %p1940_p4 = scmp.lt.u32.totalorder %s1938_s20, %s1933_s24  ;;  %p1942_p11 = scmp.lt.u32.totalorder %s1933_s24, %s2363_s6 }
  0x5b   : > { %p1936_p2 = pnand %p1934_p13, %p2329_p9 }
  0x5c   : > { %p1941_p7 = por %p1940_p4, %p1939_p6 }
  0x5d   : > { %p1937_p0 = pneg %p1936_p2 }
  0x5e   : > { %p1943_p12 = por %p1942_p11, %p1941_p7 }
  0x60   : > { %p1944_p5 = pnand %p1943_p12, %p1937_p0 }
  0x62   : > { %1947 = shalt.err (!%p1944_p5)
}
  0x63   : > { %s1948_s1 = scalar_lea.vmem %s2366_s9, 32  ;;  %s2169_s26 = smov [#allocation9]  }
  0x64   : > { %p1949_p10 = scmp.ne.s32.totalorder %s2366_s9, %s1948_s1  ;;  %s1953_s8 = sshll.u32 %s2169_s26, 4  ;;  %s1954_s8 = int_to_ptr.vmem [resolvable:$false] %s1953_s8 }
  0x65   : > { %s1955_s14 = scalar_lea.vmem %s1954_s8, 64  ;;  %p1956_p13 = scmp.lt.s32.totalorder %s2366_s9, %s1954_s8 }
  0x66   : > { %p1951_p1 = pnand %p1949_p10, %p2329_p9  ;;  %p1957_p2 = scmp.lt.s32.totalorder %s1955_s14, %s1948_s1 }
  0x68   : > { %p1952_p3 = pneg %p1951_p1  ;;  %p1958_p6 = por %p1957_p2, %p1956_p13 }
  0x6a   : > { %p1959_p4 = pnand %p1958_p6, %p1952_p3 }
  0x6c   : > { %1962 = shalt.err (!%p1959_p4)
}
  0x6d   : > { %1707 = dma.hbm_to_vmem [thread:$0]  (!%p2801_p8), %s2363_s6, 32, %s2366_s9, %s304_s22  }
  0x6e   : > { %s1963_s19 = scalar_lea.hbm %s2765_s0, 1024  ;;  %p2803_p7 = scmp.ne.s32.totalorder %s2797_s15, 0 }
  0x6f   : > { %p1964_p0 = scmp.ne.s32.totalorder %s2765_s0, %s1963_s19  ;;  %p1970_p10 = scmp.lt.u32.totalorder %s1963_s19, %s2765_s0 }
  0x70   : > { %p2804_p11 = pneg %p2803_p7 }
  0x72   : > { %p1966_p12 = pnand %p1964_p0, %p2804_p11 }
  0x74   : > { %p1967_p5 = pneg %p1966_p12 }
  0x76   : > { %p1972_p1 = pnand %p1970_p10, %p1967_p5 }
  0x78   : > { %1975 = shalt.err (!%p1972_p1)
}
  0x79   : > { %s1976_s9 = scalar_lea.vmem %s239_s29, 1024  ;;  %p2805_p13 = pmov %p2804_p11 }
  0x7a   : > { %p1977_p3 = scmp.ne.s32.totalorder %s239_s29, %s1976_s9  ;;  %p1984_p4 = scmp.lt.s32.totalorder %s239_s29, %s239_s29 }
  0x7b   : > { %p1985_p8 = scmp.lt.s32.totalorder %s1976_s9, %s1976_s9 }
  0x7c   : > { %p1979_p2 = pnand %p1977_p3, %p2805_p13 }
  0x7d   : > { %p1986_p9 = por %p1985_p8, %p1984_p4 }
  0x7e   : > { %p1980_p6 = pneg %p1979_p2 }
  0x80   : > { %p1987_p0 = pnand %p1986_p9, %p1980_p6 }
  0x82   : > { %1990 = shalt.err (!%p1987_p0)
}
  0x83   : > { %s2806_s6 = smov 128   ;;  %s2422_s20 = scalar_lea.hbm %s2767_s2, %s2357_s13 }
  0x84   : > { %1694 = dma.hbm_to_vmem [thread:$0]  (!%p2803_p7), %s2765_s0, 1024, %s239_s29, [#allocation4], %s2806_s6, %s2806_s6, %s2167_s23  }
  0x85   : > { %s288_s15 = scalar_lea.vmem [#allocation8], %s2322_s30  ;;  %s1991_s1 = scalar_lea.hbm %s2422_s20, 32 }
  0x86   : > { %s296_s26 = sshll.u32 %s288_s15, 4  ;;  %p1992_p8 = scmp.ne.s32.totalorder %s2422_s20, %s1991_s1  ;;  %s297_s26 = int_to_ptr.vmem [resolvable:$true] %s296_s26 }
  0x87   : > { %p2807_p9 = scmp.ne.s32.totalorder %s2802_s10, 0  ;;  %s1996_s29 = scalar_lea.hbm %s2767_s2, 64 }
  0x88   : > { %p1997_p7 = scmp.lt.u32.totalorder %s2422_s20, %s2767_s2  ;;  %p1998_p5 = scmp.lt.u32.totalorder %s1996_s29, %s1991_s1 }
  0x89   : > { %p1994_p11 = pnand %p1992_p8, %p2807_p9  ;;  %p2000_p1 = scmp.lt.u32.totalorder %s1991_s1, %s2422_s20 }
  0x8a   : > { %p1999_p10 = por %p1998_p5, %p1997_p7 }
  0x8b   : > { %p1995_p12 = pneg %p1994_p11 }
  0x8c   : > { %p2001_p3 = por %p2000_p1, %p1999_p10 }
  0x8e   : > { %p2002_p13 = pnand %p2001_p3, %p1995_p12 }
  0x90   : > { %2005 = shalt.err (!%p2002_p13)
}
  0x91   : > { %s2006_s24 = scalar_lea.vmem %s297_s26, 32  ;;  %s2170_s19 = smov [#allocation8]  }
  0x92   : > { %p2007_p2 = scmp.ne.s32.totalorder %s297_s26, %s2006_s24  ;;  %s2011_s15 = sshll.u32 %s2170_s19, 4  ;;  %s2012_s15 = int_to_ptr.vmem [resolvable:$false] %s2011_s15 }
  0x93   : > { %s2013_s8 = scalar_lea.vmem %s2012_s15, 64  ;;  %p2014_p0 = scmp.lt.s32.totalorder %s297_s26, %s2012_s15 }
  0x94   : > { %p2009_p6 = pnand %p2007_p2, %p2807_p9  ;;  %p2015_p8 = scmp.lt.s32.totalorder %s2013_s8, %s2006_s24 }
  0x96   : > { %p2010_p4 = pneg %p2009_p6  ;;  %p2016_p11 = por %p2015_p8, %p2014_p0 }
  0x98   : > { %p2017_p5 = pnand %p2016_p11, %p2010_p4 }
  0x9a   : > { %2020 = shalt.err (!%p2017_p5)
}
  0x9b   : > { %p2808_p7 = scmp.ne.s32.totalorder %s2798_s16, 0  ;;  %s2809_s1 = scalar_lea.sflag [#allocation7], %s2286_s17 }
  0x9c   : > { %s2448_s14 = scalar_lea.hbm %s2769_s4, %s2357_s13  ;;  %s326_s21 = scalar_lea.vmem [#allocation11], %s2322_s30 }
  0x9d   : > { %1704 = dma.hbm_to_vmem [thread:$0]  (!%p2808_p7), %s2422_s20, 32, %s297_s26, %s2809_s1  }
  0x9e   : > { %s334_s24 = sshll.u32 %s326_s21, 4  ;;  %s2021_s19 = scalar_lea.hbm %s2448_s14, 32  ;;  %s335_s24 = int_to_ptr.vmem [resolvable:$true] %s334_s24 }
  0x9f   : > { %p2022_p12 = scmp.ne.s32.totalorder %s2448_s14, %s2021_s19  ;;  %s2026_s20 = scalar_lea.hbm %s2769_s4, 64 }
  0xa0   : > { %p2027_p3 = scmp.lt.u32.totalorder %s2448_s14, %s2769_s4  ;;  %p2028_p13 = scmp.lt.u32.totalorder %s2026_s20, %s2021_s19 }
  0xa1   : > { %p2024_p10 = pnand %p2022_p12, %p2807_p9  ;;  %p2030_p6 = scmp.lt.u32.totalorder %s2021_s19, %s2448_s14 }
  0xa2   : > { %p2029_p2 = por %p2028_p13, %p2027_p3 }
  0xa3   : > { %p2025_p1 = pneg %p2024_p10 }
  0xa4   : > { %p2031_p4 = por %p2030_p6, %p2029_p2 }
  0xa6   : > { %p2032_p0 = pnand %p2031_p4, %p2025_p1 }
  0xa8   : > { %2035 = shalt.err (!%p2032_p0)
}
  0xa9   : > { %s2036_s30 = scalar_lea.vmem %s335_s24, 32  ;;  %s2171_s13 = smov [#allocation11]  }
  0xaa   : > { %p2037_p8 = scmp.ne.s32.totalorder %s335_s24, %s2036_s30  ;;  %s2041_s9 = sshll.u32 %s2171_s13, 4  ;;  %s2042_s9 = int_to_ptr.vmem [resolvable:$false] %s2041_s9 }
  0xab   : > { %s2043_s29 = scalar_lea.vmem %s2042_s9, 64  ;;  %p2044_p12 = scmp.lt.s32.totalorder %s335_s24, %s2042_s9 }
  0xac   : > { %p2039_p11 = pnand %p2037_p8, %p2807_p9  ;;  %p2045_p10 = scmp.lt.s32.totalorder %s2043_s29, %s2036_s30 }
  0xae   : > { %p2040_p5 = pneg %p2039_p11  ;;  %p2046_p7 = por %p2045_p10, %p2044_p12 }
  0xb0   : > { %p2047_p3 = pnand %p2046_p7, %p2040_p5 }
  0xb2   : > { %2050 = shalt.err (!%p2047_p3)
}
  0xb3   : > { %p2810_p13 = scmp.ne.s32.totalorder %s2798_s16, 0  ;;  %s1668_s21 = sshll.u32 %s2161_s27, 12 }
  0xb4   : > { %s2474_s8 = scalar_lea.hbm %s2770_s5, %s1668_s21  ;;  %s345_s20 = scalar_lea.vmem [#allocation12], %s2311_s18 }
  0xb5   : > { %1710 = dma.hbm_to_vmem [thread:$0]  (!%p2810_p13), %s2448_s14, 32, %s335_s24, %s304_s22  }
  0xb6   : > { %s353_s26 = sshll.u32 %s345_s20, 4  ;;  %s342_s1 = scalar_lea.sflag [#allocation13], %s2286_s17  ;;  %s2477_s26 = int_to_ptr.vmem [resolvable:$true] %s353_s26 }
  0xb7   : > { %s2051_s30 = scalar_lea.hbm %s2474_s8, 4096  ;;  %s2056_s14 = scalar_lea.hbm %s2770_s5, 8192 }
  0xb8   : > { %p2052_p7 = scmp.ne.s32.totalorder %s2474_s8, %s2051_s30  ;;  %p2057_p6 = scmp.lt.u32.totalorder %s2474_s8, %s2770_s5 }
  0xb9   : > { %p2058_p4 = scmp.lt.u32.totalorder %s2056_s14, %s2051_s30  ;;  %p2060_p8 = scmp.lt.u32.totalorder %s2051_s30, %s2474_s8 }
  0xba   : > { %p2054_p1 = pnand %p2052_p7, %p2807_p9 }
  0xbb   : > { %p2059_p0 = por %p2058_p4, %p2057_p6 }
  0xbc   : > { %p2055_p2 = pneg %p2054_p1 }
  0xbd   : > { %p2061_p11 = por %p2060_p8, %p2059_p0 }
  0xbf   : > { %p2062_p5 = pnand %p2061_p11, %p2055_p2 }
  0xc1   : > { %2065 = shalt.err (!%p2062_p5)
}
  0xc2   : > { %s2066_s18 = scalar_lea.vmem %s2477_s26, 4096  ;;  %s2172_s9 = smov [#allocation12]  }
  0xc3   : > { %p2067_p12 = scmp.ne.s32.totalorder %s2477_s26, %s2066_s18  ;;  %s2071_s29 = sshll.u32 %s2172_s9, 4  ;;  %s2072_s29 = int_to_ptr.vmem [resolvable:$false] %s2071_s29 }
  0xc4   : > { %s2073_s21 = scalar_lea.vmem %s2072_s29, 8192  ;;  %p2074_p7 = scmp.lt.s32.totalorder %s2477_s26, %s2072_s29 }
  0xc5   : > { %p2069_p10 = pnand %p2067_p12, %p2807_p9  ;;  %p2075_p1 = scmp.lt.s32.totalorder %s2073_s21, %s2066_s18 }
  0xc7   : > { %p2070_p3 = pneg %p2069_p10  ;;  %p2076_p6 = por %p2075_p1, %p2074_p7 }
  0xc9   : > { %p2077_p4 = pnand %p2076_p6, %p2070_p3 }
  0xcb   : > { %2080 = shalt.err (!%p2077_p4)
}
  0xcc   : > { %1713 = dma.hbm_to_vmem [thread:$0]  (!%p2810_p13), %s2474_s8, 4096, %s2477_s26, %s342_s1, %s2806_s6, %s2806_s6, %s2167_s23  }
  0xcd   : > { %p2811_p9 = scmp.ne.s32.totalorder %s2796_s12, 0 }
  0xce   : > { %p2812_p2 = scmp.eq.s32.totalorder (!%p2811_p9), %s2237_s28, 0 }
  0xcf   : > { %365 = sbr.rel (%p2811_p9) target bundleno = 887 (0x377), region = 48 }
  0xd6   : > { %2124 = dma.done.wait (%p2812_p2), [#allocation4], 1024   ;;  %p2813_p0 = pmov %p2812_p2 }
  0xd7   : > { %s371_s16 = sand.u32 1, %s2237_s28   ;;  %s373_s10 = sand.u32 1, %s2153_s25  }
  0xd8   : > { %2126 = vsyncadd (%p2813_p0), [#allocation4], 4294966272  ;;  %s1579_s19 = sshll.u32 %s373_s10, 8  ;;  %s372_s15 = scalar_lea.sflag [#allocation7], %s371_s16 }
  0xd9   : > { %s2514_s17 = scalar_lea.vmem [#allocation6], %s1579_s19  ;;  %p2814_p8 = scmp.ne.s32.totalorder %s2795_s11, 0 }
  0xdb   : > { %2128 = dma.done.wait (%p2814_p8), %s372_s15, 4128  }
  0xdc   : > { %2130 = vsyncadd (%p2814_p8), %s372_s15, 4294963168  ;;  %s2520_s12 = sshll.u32 %s373_s10, 1  ;;  %s390_s6 = scalar_lea.sflag [#allocation10], %s371_s16 }
  0xdd   : > { %s384_s23 = scalar_lea.vmem [#allocation8], %s2520_s12  ;;  %s393_s8 = scalar_lea.vmem [#allocation9], %s2520_s12 }
  0xde   : > { %2132 = dma.done.wait (%p2814_p8), %s390_s6, 64  }
  0xdf   : > { %2134 = vsyncadd (%p2814_p8), %s390_s6, 4294967232  ;;  %s402_s20 = scalar_lea.vmem [#allocation11], %s2520_s12  ;;  %s408_s26 = scalar_lea.sflag [#allocation13], %s371_s16 }
  0xe0   : > { %s2529_s1 = scalar_lea.vmem [#allocation12], %s1579_s19 }
  0xe1   : > { %2136 = dma.done.wait (%p2814_p8), %s408_s26, 4096  }
  0xe2   : > { %2138 = vsyncadd (%p2814_p8), %s408_s26, 4294963200  ;;  %p2815_p13 = pmov %p2813_p0 }
  0xe3   : > { %p2816_p11 = pmov %p2813_p0 }
  0xe4   : > { %2140 = dma.done.wait (%p2815_p13), [#allocation13], 32  }
  0xe5   : > { %2142 = vsyncadd (%p2816_p11), [#allocation13], 4294967264  ;;  %p2817_p5 = scmp.ne.s32.totalorder %s2237_s28, 0 }
  0xe6   : > { %v2173_v0 = vmov (!%p2817_p5), 0.0  }
  0xe7   : > { %469 = sbr.rel (%p2817_p5) target bundleno = 239 (0xef), region = 80  ;;  %470 = vst [vmem:[#allocation2] sm:$0xff] (!%p2817_p5), %v2173_v0  ;;  %471 = vst [vmem:[#allocation2 + $0x8] sm:$0xff] (!%p2817_p5), %v2173_v0 }
  0xe8   : > { %472 = vst [vmem:[#allocation2 + $0x10] sm:$0xff] (!%p2817_p5), %v2173_v0  ;;  %473 = vst [vmem:[#allocation2 + $0x18] sm:$0xff] (!%p2817_p5), %v2173_v0 }
  0xe9   : > { %474 = vst [vmem:[#allocation2 + $0x20] sm:$0xff] (!%p2817_p5), %v2173_v0  ;;  %475 = vst [vmem:[#allocation2 + $0x28] sm:$0xff] (!%p2817_p5), %v2173_v0 }
  0xea   : > { %476 = vst [vmem:[#allocation2 + $0x30] sm:$0xff] (!%p2817_p5), %v2173_v0  ;;  %477 = vst [vmem:[#allocation2 + $0x38] sm:$0xff] (!%p2817_p5), %v2173_v0 }
  0xeb   : > { %478 = vst [vmem:[#allocation2 + $0x40] sm:$0xff] (!%p2817_p5), %v2173_v0  ;;  %479 = vst [vmem:[#allocation2 + $0x48] sm:$0xff] (!%p2817_p5), %v2173_v0 }
  0xec   : > { %480 = vst [vmem:[#allocation2 + $0x50] sm:$0xff] (!%p2817_p5), %v2173_v0  ;;  %481 = vst [vmem:[#allocation2 + $0x58] sm:$0xff] (!%p2817_p5), %v2173_v0 }
  0xed   : > { %482 = vst [vmem:[#allocation2 + $0x60] sm:$0xff] (!%p2817_p5), %v2173_v0  ;;  %483 = vst [vmem:[#allocation2 + $0x68] sm:$0xff] (!%p2817_p5), %v2173_v0 }
  0xee   : > { %484 = vst [vmem:[#allocation2 + $0x70] sm:$0xff] %v2173_v0  ;;  %485 = vst [vmem:[#allocation2 + $0x78] sm:$0xff] %v2173_v0 }
  0xef PF: > { %v1763_v1 = vld [vmem:[%s2514_s17 + $0x4] ss:$8 sps:$4 sm:$0xff]   ;;  %v1765_v2 = vld [vmem:[%s2514_s17] ss:$8 sps:$4 sm:$0xff]   ;;  %v1766_v3 = vld [vmem:[%s2514_s17 + $0x14] ss:$8 sps:$4 sm:$0xff]  }
  0xf0   : > { %738 = vmatprep.subr.bf16.mxu0 %v1763_v1  ;;  %v1768_v4 = vld [vmem:[%s2514_s17 + $0x10] ss:$8 sps:$4 sm:$0xff]   ;;  %v1769_v5 = vld [vmem:[%s2514_s17 + $0x24] ss:$8 sps:$4 sm:$0xff]   ;;  %v1771_v6 = vld [vmem:[%s2514_s17 + $0x20] ss:$8 sps:$4 sm:$0xff]  }
  0xf1   : > { %739 = vmatpush1.bf16.msra.mxu0 %v1765_v2  ;;  %v1772_v7 = vld [vmem:[%s2514_s17 + $0x34] ss:$8 sps:$4 sm:$0xff]   ;;  %v1774_v8 = vld [vmem:[%s2514_s17 + $0x30] ss:$8 sps:$4 sm:$0xff]   ;;  %v1775_v9 = vld [vmem:[%s2514_s17 + $0x44] ss:$8 sps:$4 sm:$0xff]  }
  0xf2   : > { %740 = vmatprep.subr.bf16.mxu0 %v1766_v3  ;;  %v1777_v10 = vld [vmem:[%s2514_s17 + $0x40] ss:$8 sps:$4 sm:$0xff]   ;;  %v1778_v11 = vld [vmem:[%s2514_s17 + $0x54] ss:$8 sps:$4 sm:$0xff]   ;;  %v1780_v12 = vld [vmem:[%s2514_s17 + $0x50] ss:$8 sps:$4 sm:$0xff]  }
  0xf3   : > { %v1781_v13 = vld [vmem:[%s2514_s17 + $0x64] ss:$8 sps:$4 sm:$0xff]   ;;  %v1783_v15 = vld [vmem:[%s2514_s17 + $0x60] ss:$8 sps:$4 sm:$0xff]   ;;  %v1784_v16 = vld [vmem:[%s2514_s17 + $0x74] ss:$8 sps:$4 sm:$0xff]  }
  0xf4   : > { %v1813_v14 = vld [vmem:[#allocation3 + $0x4] ss:$8 sps:$4 sm:$0xff]   ;;  %v1786_v17 = vld [vmem:[%s2514_s17 + $0x70] ss:$8 sps:$4 sm:$0xff]   ;;  %v1789_v19 = vld [vmem:[%s2514_s17 + $0x80] ss:$8 sps:$4 sm:$0xff]  }
  0xf5   : > { %741 = vmatpush1.bf16.msra.mxu0 %v1768_v4  ;;  %770 = vmatprep.mubr.bf16.mxu0 %v1813_v14  ;;  %v1787_v18 = vld [vmem:[%s2514_s17 + $0x84] ss:$8 sps:$4 sm:$0xff]   ;;  %v1790_v20 = vld [vmem:[%s2514_s17 + $0x94] ss:$8 sps:$4 sm:$0xff]   ;;  %v1792_v21 = vld [vmem:[%s2514_s17 + $0x90] ss:$8 sps:$4 sm:$0xff]  }
  0xf6   : > { %742 = vmatprep.subr.bf16.mxu0 %v1769_v5  ;;  %v1793_v22 = vld [vmem:[%s2514_s17 + $0xa4] ss:$8 sps:$4 sm:$0xff]   ;;  %v1795_v23 = vld [vmem:[%s2514_s17 + $0xa0] ss:$8 sps:$4 sm:$0xff]   ;;  %v1796_v24 = vld [vmem:[%s2514_s17 + $0xb4] ss:$8 sps:$4 sm:$0xff]  }
  0xf7   : > { %v1798_v25 = vld [vmem:[%s2514_s17 + $0xb0] ss:$8 sps:$4 sm:$0xff]   ;;  %v1799_v26 = vld [vmem:[%s2514_s17 + $0xc4] ss:$8 sps:$4 sm:$0xff]   ;;  %v1801_v27 = vld [vmem:[%s2514_s17 + $0xc0] ss:$8 sps:$4 sm:$0xff]  }
  0xf8   : > { %v1802_v28 = vld [vmem:[%s2514_s17 + $0xd4] ss:$8 sps:$4 sm:$0xff]   ;;  %v1804_v29 = vld [vmem:[%s2514_s17 + $0xd0] ss:$8 sps:$4 sm:$0xff]   ;;  %v1805_v30 = vld [vmem:[%s2514_s17 + $0xe4] ss:$8 sps:$4 sm:$0xff]  }
  0xf9   : > { %743 = vmatpush1.bf16.msra.mxu0 %v1771_v6  ;;  %v1807_v31 = vld [vmem:[%s2514_s17 + $0xe0] ss:$8 sps:$4 sm:$0xff]   ;;  %v1808_v32 = vld [vmem:[%s2514_s17 + $0xf4] ss:$8 sps:$4 sm:$0xff]   ;;  %v1810_v33 = vld [vmem:[%s2514_s17 + $0xf0] ss:$8 sps:$4 sm:$0xff]  }
  0xfa   : > { %744 = vmatprep.subr.bf16.mxu0 %v1772_v7  ;;  %v1811_v34 = vld [vmem:[#allocation3] ss:$8 sps:$4 sm:$0xff]   ;;  %v1814_v35 = vld [vmem:[#allocation3 + $0x14] ss:$8 sps:$4 sm:$0xff]   ;;  %v1816_v36 = vld [vmem:[#allocation3 + $0x10] ss:$8 sps:$4 sm:$0xff]  }
  0xfb   : > { %v1817_v37 = vld [vmem:[#allocation3 + $0x24] ss:$8 sps:$4 sm:$0xff]   ;;  %v1819_v38 = vld [vmem:[#allocation3 + $0x20] ss:$8 sps:$4 sm:$0xff]   ;;  %v1820_v39 = vld [vmem:[#allocation3 + $0x34] ss:$8 sps:$4 sm:$0xff]  }
  0xfc   : > { %v1822_v40 = vld [vmem:[#allocation3 + $0x30] ss:$8 sps:$4 sm:$0xff]   ;;  %v1825_v42 = vld [vmem:[%s2529_s1] ss:$8 sps:$4 sm:$0xff]   ;;  %v1826_v43 = vld [vmem:[%s2529_s1 + $0x14] ss:$8 sps:$4 sm:$0xff]  }
  0xfd   : > { %745 = vmatpush1.bf16.msra.mxu0 %v1774_v8  ;;  %v1823_v41 = vld [vmem:[%s2529_s1 + $0x4] ss:$8 sps:$4 sm:$0xff]   ;;  %v1828_v44 = vld [vmem:[%s2529_s1 + $0x10] ss:$8 sps:$4 sm:$0xff]   ;;  %v1831_v46 = vld [vmem:[%s2529_s1 + $0x20] ss:$8 sps:$4 sm:$0xff]  }
  0xfe   : > { %746 = vmatprep.subr.bf16.mxu0 %v1775_v9  ;;  %1221 = vmatprep.subr.bf16.mxu1 %v1823_v41  ;;  %v1829_v45 = vld [vmem:[%s2529_s1 + $0x24] ss:$8 sps:$4 sm:$0xff]   ;;  %v1832_v47 = vld [vmem:[%s2529_s1 + $0x34] ss:$8 sps:$4 sm:$0xff]   ;;  %v1834_v48 = vld [vmem:[%s2529_s1 + $0x30] ss:$8 sps:$4 sm:$0xff]   ;;  %v528_v9 = vlaneseq }
  0xff   : > { %1222 = vmatpush1.bf16.msra.mxu1 %v1825_v42  ;;  %v1835_v49 = vld [vmem:[%s2529_s1 + $0x44] ss:$8 sps:$4 sm:$0xff]   ;;  %v1837_v50 = vld [vmem:[%s2529_s1 + $0x40] ss:$8 sps:$4 sm:$0xff]   ;;  %v1838_v51 = vld [vmem:[%s2529_s1 + $0x54] ss:$8 sps:$4 sm:$0xff]  }
 0x100   : > { %1223 = vmatprep.subr.bf16.mxu1 %v1826_v43  ;;  %v1840_v52 = vld [vmem:[%s2529_s1 + $0x50] ss:$8 sps:$4 sm:$0xff]   ;;  %v1841_v53 = vld [vmem:[%s2529_s1 + $0x64] ss:$8 sps:$4 sm:$0xff]   ;;  %v1843_v54 = vld [vmem:[%s2529_s1 + $0x60] ss:$8 sps:$4 sm:$0xff]  }
 0x101   : > { %747 = vmatpush1.bf16.msra.mxu0 %v1777_v10  ;;  %v1844_v55 = vld [vmem:[%s2529_s1 + $0x74] ss:$8 sps:$4 sm:$0xff]   ;;  %v1846_v56 = vld [vmem:[%s2529_s1 + $0x70] ss:$8 sps:$4 sm:$0xff]   ;;  %v1847_v57 = vld [vmem:[%s2529_s1 + $0x84] ss:$8 sps:$4 sm:$0xff]  }
 0x102   : > { %748 = vmatprep.subr.bf16.mxu0 %v1778_v11  ;;  %v1849_v58 = vld [vmem:[%s2529_s1 + $0x80] ss:$8 sps:$4 sm:$0xff]   ;;  %v1850_v59 = vld [vmem:[%s2529_s1 + $0x94] ss:$8 sps:$4 sm:$0xff]   ;;  %v1852_v60 = vld [vmem:[%s2529_s1 + $0x90] ss:$8 sps:$4 sm:$0xff]  }
 0x103   : > { %1224 = vmatpush1.bf16.msra.mxu1 %v1828_v44  ;;  %v1853_v61 = vld [vmem:[%s2529_s1 + $0xa4] ss:$8 sps:$4 sm:$0xff]   ;;  %v1855_v62 = vld [vmem:[%s2529_s1 + $0xa0] ss:$8 sps:$4 sm:$0xff]   ;;  %v1856_v63 = vld [vmem:[%s2529_s1 + $0xb4] ss:$8 sps:$4 sm:$0xff]  }
 0x104   : > { %1225 = vmatprep.subr.bf16.mxu1 %v1829_v45  ;;  %v1858_v0 = vld [vmem:[%s2529_s1 + $0xb0] ss:$8 sps:$4 sm:$0xff]   ;;  %v1859_v1 = vld [vmem:[%s2529_s1 + $0xc4] ss:$8 sps:$4 sm:$0xff]   ;;  %v1861_v2 = vld [vmem:[%s2529_s1 + $0xc0] ss:$8 sps:$4 sm:$0xff]  }
 0x105   : > { %749 = vmatpush1.bf16.msra.mxu0 %v1780_v12  ;;  %v1862_v3 = vld [vmem:[%s2529_s1 + $0xd4] ss:$8 sps:$4 sm:$0xff]   ;;  %v1864_v4 = vld [vmem:[%s2529_s1 + $0xd0] ss:$8 sps:$4 sm:$0xff]   ;;  %v1865_v5 = vld [vmem:[%s2529_s1 + $0xe4] ss:$8 sps:$4 sm:$0xff]  }
 0x106   : > { %750 = vmatprep.subr.bf16.mxu0 %v1781_v13  ;;  %v1867_v6 = vld [vmem:[%s2529_s1 + $0xe0] ss:$8 sps:$4 sm:$0xff]   ;;  %v1868_v7 = vld [vmem:[%s2529_s1 + $0xf4] ss:$8 sps:$4 sm:$0xff]   ;;  %v1870_v8 = vld [vmem:[%s2529_s1 + $0xf0] ss:$8 sps:$4 sm:$0xff]  }
 0x107   : > { %1226 = vmatpush1.bf16.msra.mxu1 %v1831_v46  ;;  %v2605_v10 = vshrl.u32 %v528_v9, 7  ;;  %v526_v12 = vld [vmem:[%s384_s23] sm:$0x3]  ;;  %p1658_p12 = scmp.ne.s32.totalorder %s2237_s28, 1 }
 0x108   : > { %1227 = vmatprep.subr.bf16.mxu1 %v1832_v47 }
 0x109   : > { %751 = vmatpush1.bf16.msra.mxu0 %v1783_v15  ;;  %v2608_v11 = vsub.s32 1, %v2605_v10  ;;  %v2613_v13 = vsub.s32 0, %v2605_v10 }
 0x10a   : > { %752 = vmatprep.subr.bf16.mxu0 %v1784_v16 }
 0x10b   : > { %1228 = vmatpush1.bf16.msra.mxu1 %v1834_v48  ;;  %v2616_v16 = vrot.slane %v526_v12, %v2608_v11 }
 0x10c   : > { %1229 = vmatprep.subr.bf16.mxu1 %v1835_v49 }
 0x10d   : > { %753 = vmatpush1.bf16.msra.mxu0 %v1786_v17 }
 0x10e   : > { %754 = vmatprep.subr.bf16.mxu0 %v1787_v18  ;;  %v531_v18 = vrot.slane %v526_v12, %v2613_v13 }
 0x10f   : > { %1230 = vmatpush1.bf16.msra.mxu1 %v1837_v50 }
 0x110   : > { %1231 = vmatprep.subr.bf16.mxu1 %v1838_v51 }
 0x111   : > { %755 = vmatpush1.bf16.msra.mxu0 %v1789_v19 }
 0x112   : > { %756 = vmatprep.subr.bf16.mxu0 %v1790_v20 }
 0x113   : > { %1232 = vmatpush1.bf16.msra.mxu1 %v1840_v52 }
 0x114   : > { %1233 = vmatprep.subr.bf16.mxu1 %v1841_v53 }
 0x115   : > { %757 = vmatpush1.bf16.msra.mxu0 %v1792_v21 }
 0x116   : > { %758 = vmatprep.subr.bf16.mxu0 %v1793_v22 }
 0x117   : > { %1234 = vmatpush1.bf16.msra.mxu1 %v1843_v54 }
 0x118   : > { %1235 = vmatprep.subr.bf16.mxu1 %v1844_v55 }
 0x119   : > { %759 = vmatpush1.bf16.msra.mxu0 %v1795_v23 }
 0x11a   : > { %760 = vmatprep.subr.bf16.mxu0 %v1796_v24 }
 0x11b   : > { %1236 = vmatpush1.bf16.msra.mxu1 %v1846_v56 }
 0x11c   : > { %1237 = vmatprep.subr.bf16.mxu1 %v1847_v57 }
 0x11d   : > { %761 = vmatpush1.bf16.msra.mxu0 %v1798_v25 }
 0x11e   : > { %762 = vmatprep.subr.bf16.mxu0 %v1799_v26 }
 0x11f   : > { %1238 = vmatpush1.bf16.msra.mxu1 %v1849_v58 }
 0x120   : > { %1239 = vmatprep.subr.bf16.mxu1 %v1850_v59 }
 0x121   : > { %763 = vmatpush1.bf16.msra.mxu0 %v1801_v27 }
 0x122   : > { %764 = vmatprep.subr.bf16.mxu0 %v1802_v28 }
 0x123   : > { %1240 = vmatpush1.bf16.msra.mxu1 %v1852_v60 }
 0x124   : > { %1241 = vmatprep.subr.bf16.mxu1 %v1853_v61 }
 0x125   : > { %765 = vmatpush1.bf16.msra.mxu0 %v1804_v29 }
 0x126   : > { %766 = vmatprep.subr.bf16.mxu0 %v1805_v30 }
 0x127   : > { %1242 = vmatpush1.bf16.msra.mxu1 %v1855_v62 }
 0x128   : > { %1243 = vmatprep.subr.bf16.mxu1 %v1856_v63 }
 0x129   : > { %767 = vmatpush1.bf16.msra.mxu0 %v1807_v31 }
 0x12a   : > { %768 = vmatprep.subr.bf16.mxu0 %v1808_v32 }
 0x12b   : > { %1244 = vmatpush1.bf16.msra.mxu1 %v1858_v0 }
 0x12c   : > { %1245 = vmatprep.subr.bf16.mxu1 %v1859_v1 }
 0x12d   : > { %769 = vmatpush1.bf16.msra.mxu0 %v1810_v33 }
 0x12f   : > { %1246 = vmatpush1.bf16.msra.mxu1 %v1861_v2 }
 0x130   : > { %771 = vmatmul.mubr.bf16.vlgmr.msra.gmra.mrb[0].mxu0 %v1811_v34  ;;  %1247 = vmatprep.subr.bf16.mxu1 %v1862_v3 }
 0x131   : > { %780 = vmatprep.mubr.bf16.mxu0 %v1814_v35 }
 0x133   : > { %1248 = vmatpush1.bf16.msra.mxu1 %v1864_v4 }
 0x134   : > { %1249 = vmatprep.subr.bf16.mxu1 %v1865_v5 }
 0x137   : > { %1250 = vmatpush1.bf16.msra.mxu1 %v1867_v6 }
 0x138   : > { %781 = vmatmul.mubr.bf16.gmra.mrb[4].mxu0 %v1816_v36  ;;  %1251 = vmatprep.subr.bf16.mxu1 %v1868_v7 }
 0x139   : > { %790 = vmatprep.mubr.bf16.mxu0 %v1817_v37 }
 0x13b   : > { %1252 = vmatpush1.bf16.msra.mxu1 %v1870_v8 }
 0x140   : > { %791 = vmatmul.mubr.bf16.gmra.mrb[8].mxu0 %v1819_v38 }
 0x141   : > { %800 = vmatprep.mubr.bf16.mxu0 %v1820_v39 }
 0x148   : > { %801 = vmatmul.mubr.bf16.gmra.mrb[12].mxu0 %v1822_v40 }
 0x203   : > { %v772_v14 = vpop.f32.mrb[0].mxu0 }
 0x204   : > { %v774_v15 = vpop.f32.mrb[1].mxu0  ;;  %v2627_v23 = vadd.f32 %v772_v14, %v531_v18 }
 0x205   : > { %v776_v17 = vpop.f32.mrb[2].mxu0  ;;  %v2625_v22 = vadd.f32 %v774_v15, %v2616_v16 }
 0x206   : > { %v778_v19 = vpop.f32.mrb[3].mxu0  ;;  %v2622_v21 = vadd.f32 %v776_v17, %v531_v18  ;;  %v839_v33 = vmul.f32 %v2627_v23, %v2627_v23 }
 0x207   : > { %v2620_v20 = vadd.f32 %v778_v19, %v2616_v16  ;;  %v840_v29 = vmul.f32 %v2625_v22, %v2625_v22 }
 0x208   : > { %v841_v26 = vmul.f32 %v2622_v21, %v2622_v21  ;;  %v811_v34 = vadd.f32 %v2622_v21, %v2627_v23 }
 0x209   : > { %v842_v24 = vmul.f32 %v2620_v20, %v2620_v20  ;;  %v824_v30 = vadd.f32 %v2620_v20, %v2625_v22 }
 0x20a   : > { %v855_v42 = vadd.f32 %v841_v26, %v839_v33 }
 0x20b   : > { %v782_v25 = vpop.f32.mrb[4].mxu0  ;;  %v868_v38 = vadd.f32 %v842_v24, %v840_v29 }
 0x20c   : > { %v2633_v27 = vadd.f32 %v782_v25, %v531_v18  ;;  %v784_v28 = vpop.f32.mrb[5].mxu0 }
 0x20d   : > { %v2640_v31 = vadd.f32 %v784_v28, %v2616_v16  ;;  %v786_v32 = vpop.f32.mrb[6].mxu0 }
 0x20e   : > { %v843_v35 = vmul.f32 %v2633_v27, %v2633_v27  ;;  %v2648_v36 = vadd.f32 %v786_v32, %v531_v18  ;;  %v788_v37 = vpop.f32.mrb[7].mxu0  ;;  %v812_v43 = vadd.f32 %v811_v34, %v2633_v27 }
 0x20f   : > { %v825_v39 = vadd.f32 %v824_v30, %v2640_v31  ;;  %v844_v40 = vmul.f32 %v2640_v31, %v2640_v31  ;;  %v2654_v41 = vadd.f32 %v788_v37, %v2616_v16 }
 0x210   : > { %v856_v47 = vadd.f32 %v855_v42, %v843_v35  ;;  %v845_v48 = vmul.f32 %v2648_v36, %v2648_v36  ;;  %v813_v51 = vadd.f32 %v812_v43, %v2648_v36 }
 0x211   : > { %v869_v44 = vadd.f32 %v868_v38, %v844_v40  ;;  %v826_v45 = vadd.f32 %v825_v39, %v2654_v41  ;;  %v846_v46 = vmul.f32 %v2654_v41, %v2654_v41 }
 0x212   : > { %v857_v56 = vadd.f32 %v856_v47, %v845_v48 }
 0x213   : > { %v870_v49 = vadd.f32 %v869_v44, %v846_v46  ;;  %v792_v50 = vpop.f32.mrb[8].mxu0 }
 0x214   : > { %v2663_v52 = vadd.f32 %v792_v50, %v531_v18  ;;  %v794_v53 = vpop.f32.mrb[9].mxu0 }
 0x215   : > { %v2666_v54 = vadd.f32 %v794_v53, %v2616_v16  ;;  %v796_v55 = vpop.f32.mrb[10].mxu0 }
 0x216   : > { %v814_v57 = vadd.f32 %v813_v51, %v2663_v52  ;;  %v847_v58 = vmul.f32 %v2663_v52, %v2663_v52  ;;  %v2671_v59 = vadd.f32 %v796_v55, %v531_v18  ;;  %v798_v60 = vpop.f32.mrb[11].mxu0 }
 0x217   : > { %v827_v61 = vadd.f32 %v826_v45, %v2666_v54  ;;  %v848_v62 = vmul.f32 %v2666_v54, %v2666_v54  ;;  %v2677_v63 = vadd.f32 %v798_v60, %v2616_v16 }
 0x218   : > { %v858_v0 = vadd.f32 %v857_v56, %v847_v58  ;;  %v815_v1 = vadd.f32 %v814_v57, %v2671_v59  ;;  %v849_v2 = vmul.f32 %v2671_v59, %v2671_v59 }
 0x219   : > { %v871_v3 = vadd.f32 %v870_v49, %v848_v62  ;;  %v828_v4 = vadd.f32 %v827_v61, %v2677_v63  ;;  %v850_v5 = vmul.f32 %v2677_v63, %v2677_v63 }
 0x21a   : > { %v859_v6 = vadd.f32 %v858_v0, %v849_v2 }
 0x21b   : > { %v872_v7 = vadd.f32 %v871_v3, %v850_v5  ;;  %v802_v8 = vpop.f32.mrb[12].mxu0 }
 0x21c   : > { %v2685_v9 = vadd.f32 %v802_v8, %v531_v18  ;;  %v804_v12 = vpop.f32.mrb[13].mxu0 }
 0x21d   : > { %v2688_v14 = vadd.f32 %v804_v12, %v2616_v16  ;;  %v806_v15 = vpop.f32.mrb[14].mxu0 }
 0x21e   : > { %v816_v17 = vadd.f32 %v815_v1, %v2685_v9  ;;  %v851_v19 = vmul.f32 %v2685_v9, %v2685_v9  ;;  %v2693_v24 = vadd.f32 %v806_v15, %v531_v18  ;;  %v808_v25 = vpop.f32.mrb[15].mxu0 }
 0x21f   : > { %v829_v26 = vadd.f32 %v828_v4, %v2688_v14  ;;  %v852_v28 = vmul.f32 %v2688_v14, %v2688_v14  ;;  %v809_v29 = vadd.f32 %v808_v25, %v2616_v16 }
 0x220   : > { %v860_v30 = vadd.f32 %v859_v6, %v851_v19  ;;  %v817_v32 = vadd.f32 %v816_v17, %v2693_v24  ;;  %v853_v33 = vmul.f32 %v2693_v24, %v2693_v24 }
 0x221   : > { %v873_v34 = vadd.f32 %v872_v7, %v852_v28  ;;  %v830_v35 = vadd.f32 %v829_v26, %v809_v29  ;;  %v854_v37 = vmul.f32 %v809_v29, %v809_v29  ;;  %v2174_v28 = vmov 1966171168  }
 0x222   : > { %v818_v38 = vrot.slane %v817_v32, 4  ;;  %v861_v18 = vadd.f32 %v860_v30, %v853_v33  ;;  %v898_v30 = vunpack.c.l.s4 %v2174_v28 }
 0x223   : > { %v831_v39 = vrot.slane %v830_v35, 4  ;;  %v874_v40 = vadd.f32 %v873_v34, %v854_v37 }
 0x224   : > { %v819_v42 = vadd.f32 %v818_v38, %v817_v32  ;;  %v862_v43 = vrot.slane %v861_v18, 4  ;;  %v899_v32 = vunpack.c.0.s8 %v898_v30 }
 0x225   : > { %v832_v44 = vadd.f32 %v831_v39, %v830_v35  ;;  %v875_v45 = vrot.slane %v874_v40, 4 }
 0x226   : > { %v820_v46 = vrot.slane %v819_v42, 2  ;;  %v863_v47 = vadd.f32 %v862_v43, %v861_v18  ;;  %v902_v34 = vsub.s32 %v899_v32, %v2605_v10  ;;  %v893_v18 = vld [vmem:[%s393_s8] sm:$0x3] }
 0x227   : > { %v833_v16 = vrot.slane %v832_v44, 2  ;;  %v876_v48 = vadd.f32 %v875_v45, %v874_v40 }
 0x228   : > { %v821_v49 = vadd.f32 %v820_v46, %v819_v42  ;;  %v864_v50 = vrot.slane %v863_v47, 2 }
 0x229   : > { %v834_v51 = vadd.f32 %v833_v16, %v832_v44  ;;  %v877_v53 = vrot.slane %v876_v48, 2 }
 0x22a   : > { %v822_v55 = vrot.slane %v821_v49, 1  ;;  %v865_v56 = vadd.f32 %v864_v50, %v863_v47 }
 0x22b   : > { %v835_v57 = vrot.slane %v834_v51, 1  ;;  %v878_v58 = vadd.f32 %v877_v53, %v876_v48 }
 0x22c   : > { %v823_v60 = vadd.f32 %v822_v55, %v821_v49  ;;  %v866_v61 = vrot.slane %v865_v56, 1 }
 0x22d   : > { %v836_v62 = vadd.f32 %v835_v57, %v834_v51  ;;  %v879_v0 = vrot.slane %v878_v58, 1  ;;  %v913_v57 = vld [vmem:[%s402_s20] sm:$0x3] }
 0x22e   : > { %v837_v1 = vmul.f32 0.015625, %v823_v60  ;;  %v867_v2 = vadd.f32 %v866_v61, %v865_v56 }
 0x22f   : > { %v838_v3 = vmul.f32 0.015625, %v836_v62  ;;  %v880_v4 = vadd.f32 %v879_v0, %v878_v58 }
 0x230   : > { %v881_v5 = vmul.f32 0.015625, %v867_v2  ;;  %v883_v6 = vmul.f32 %v837_v1, %v837_v1 }
 0x231   : > { %v882_v7 = vmul.f32 0.015625, %v880_v4  ;;  %v884_v8 = vmul.f32 %v838_v3, %v838_v3 }
 0x232   : > { %v885_v12 = vsub.f32 %v881_v5, %v883_v6 }
 0x233   : > { %v886_v15 = vsub.f32 %v882_v7, %v884_v8 }
 0x234   : > { %v887_v17 = vmax.f32 %v885_v12, 0.0 }
 0x235   : > { %v888_v19 = vmax.f32 %v886_v15, 0.0 }
 0x236   : > { %v889_v25 = vadd.f32 1e-05, %v887_v17 }
 0x237   : > { %v890_v26 = vadd.f32 1e-05, %v888_v19 }
 0x238   : > { %1871 = vrsqrt.f32 %v889_v25 }
 0x239   : > { %1873 = vrsqrt.f32 %v890_v26 }
 0x242   : > { %v1872_v33 = vpop.eup %1871 }
 0x243   : > { %v1874_v35 = vpop.eup %1873 }
 0x244   : > { %v896_v37 = vcombine.low %v1872_v33, %v1874_v35 }
 0x246   : > { %v903_v38 = vrot.slane %v896_v37, %v902_v34 }
 0x248   : > { %v910_v39 = vrot.slane %v903_v38, %v902_v34 }
 0x24a   : > { %v912_v40 = vmul.f32 %v910_v39, %v893_v18 }
 0x24c   : > { %v918_v42 = vrot.slane %v912_v40, %v2613_v13  ;;  %v922_v43 = vrot.slane %v912_v40, %v2608_v11 }
 0x24e   : > { %v925_v44 = vmul.f32 %v918_v42, %v837_v1  ;;  %v926_v45 = vmul.f32 %v922_v43, %v838_v3  ;;  %v961_v46 = vmul.f32 %v922_v43, %v809_v29  ;;  %v951_v47 = vmul.f32 %v922_v43, %v2640_v31 }
 0x24f   : > { %v953_v10 = vmul.f32 %v922_v43, %v2654_v41  ;;  %v952_v48 = vmul.f32 %v918_v42, %v2648_v36  ;;  %v955_v49 = vmul.f32 %v922_v43, %v2666_v54  ;;  %v957_v50 = vmul.f32 %v922_v43, %v2677_v63 }
 0x250   : > { %v929_v16 = vcombine.low %v925_v44, %v926_v45  ;;  %v954_v51 = vmul.f32 %v918_v42, %v2663_v52  ;;  %v956_v53 = vmul.f32 %v918_v42, %v2671_v59  ;;  %v959_v56 = vmul.f32 %v922_v43, %v2688_v14 }
 0x251   : > { %v958_v29 = vmul.f32 %v918_v42, %v2685_v9  ;;  %v960_v31 = vmul.f32 %v918_v42, %v2693_v24  ;;  %v947_v36 = vmul.f32 %v922_v43, %v2625_v22  ;;  %v949_v54 = vmul.f32 %v922_v43, %v2620_v20 }
 0x252   : > { %v936_v55 = vrot.slane %v929_v16, %v902_v34  ;;  %v946_v59 = vmul.f32 %v918_v42, %v2627_v23  ;;  %v948_v14 = vmul.f32 %v918_v42, %v2622_v21  ;;  %v950_v9 = vmul.f32 %v918_v42, %v2633_v27  ;;  %v1006_v16 = vld [vmem:[#allocation2 + $0x8] sm:$0xff] }
 0x254   : > { %v943_v41 = vrot.slane %v936_v55, %v902_v34 }
 0x256   : > { %v945_v58 = vsub.f32 %v913_v57, %v943_v41  ;;  %v1009_v57 = vld [vmem:[#allocation2 + $0x20] sm:$0xff]  ;;  %v1010_v41 = vld [vmem:[#allocation2 + $0x28] sm:$0xff] }
 0x258   : > { %v966_v63 = vrot.slane %v945_v58, %v2613_v13  ;;  %v970_v52 = vrot.slane %v945_v58, %v2608_v11 }
 0x25a   : > { %v974_v60 = vadd.f32 %v970_v52, %v947_v36  ;;  %v976_v24 = vadd.f32 %v970_v52, %v949_v54  ;;  %v973_v61 = vadd.f32 %v966_v63, %v946_v59  ;;  %v975_v62 = vadd.f32 %v966_v63, %v948_v14  ;;  %v1011_v36 = vld [vmem:[#allocation2 + $0x30] sm:$0xff] }
 0x25b   : > { %v978_v0 = vadd.f32 %v970_v52, %v951_v47  ;;  %v980_v1 = vadd.f32 %v970_v52, %v953_v10  ;;  %v977_v2 = vadd.f32 %v966_v63, %v950_v9  ;;  %v979_v22 = vadd.f32 %v966_v63, %v952_v48  ;;  %v1007_v48 = vld [vmem:[#allocation2 + $0x10] sm:$0xff] }
 0x25c   : > { %v990_v3 = vmax.f32 %v974_v60, 0.0  ;;  %v992_v20 = vmax.f32 %v976_v24, 0.0  ;;  %v989_v4 = vmax.f32 %v973_v61, 0.0  ;;  %v991_v5 = vmax.f32 %v975_v62, 0.0  ;;  %v1013_v61 = vld [vmem:[#allocation2 + $0x40] sm:$0xff]  ;;  %v1014_v62 = vld [vmem:[#allocation2 + $0x48] sm:$0xff] }
 0x25d   : > { %v994_v6 = vmax.f32 %v978_v0, 0.0  ;;  %v996_v7 = vmax.f32 %v980_v1, 0.0  ;;  %v993_v8 = vmax.f32 %v977_v2, 0.0  ;;  %v995_v23 = vmax.f32 %v979_v22, 0.0  ;;  %v1015_v1 = vld [vmem:[#allocation2 + $0x50] sm:$0xff] }
 0x25e   : > { %v1022_v12 = vpack.c.bf16 %v992_v20, %v990_v3  ;;  %v1021_v21 = vpack.c.bf16 %v991_v5, %v989_v4  ;;  %v982_v15 = vadd.f32 %v970_v52, %v955_v49  ;;  %v984_v27 = vadd.f32 %v970_v52, %v957_v50  ;;  %v1016_v3 = vld [vmem:[#allocation2 + $0x58] sm:$0xff] }
 0x25f   : > { %v1024_v17 = vpack.c.bf16 %v996_v7, %v994_v6  ;;  %v1023_v19 = vpack.c.bf16 %v995_v23, %v993_v8  ;;  %v981_v25 = vadd.f32 %v966_v63, %v954_v51  ;;  %v983_v26 = vadd.f32 %v966_v63, %v956_v53  ;;  %v1008_v51 = vld [vmem:[#allocation2 + $0x18] sm:$0xff]  ;;  %v1017_v8 = vld [vmem:[#allocation2 + $0x60] sm:$0xff]  ;;  %v1018_v23 = vld [vmem:[#allocation2 + $0x68] sm:$0xff] }
 0x260   : > { %1253 = vmatprep.mubr.bf16.mxu1 %v1022_v12  ;;  %v998_v28 = vmax.f32 %v982_v15, 0.0  ;;  %v1000_v30 = vmax.f32 %v984_v27, 0.0  ;;  %v986_v32 = vadd.f32 %v970_v52, %v959_v56  ;;  %v988_v33 = vadd.f32 %v970_v52, %v961_v46  ;;  %v1005_v46 = vld [vmem:[#allocation2] sm:$0xff]  ;;  %v1012_v52 = vld [vmem:[#allocation2 + $0x38] sm:$0xff] }
 0x261   : > { %1254 = vmatmul.mubr.bf16.vlgmr.msra.gmra.mrb[0].mxu1 %v1021_v21  ;;  %v997_v34 = vmax.f32 %v981_v25, 0.0  ;;  %v999_v35 = vmax.f32 %v983_v26, 0.0  ;;  %v985_v37 = vadd.f32 %v966_v63, %v958_v29  ;;  %v987_v38 = vadd.f32 %v966_v63, %v960_v31  ;;  %v1019_v21 = vld [vmem:[#allocation2 + $0x70] sm:$0xff] }
 0x262   : > { %1263 = vmatprep.mubr.bf16.mxu1 %v1024_v17  ;;  %v1026_v18 = vpack.c.bf16 %v1000_v30, %v998_v28  ;;  %v1002_v39 = vmax.f32 %v986_v32, 0.0  ;;  %v1004_v40 = vmax.f32 %v988_v33, 0.0  ;;  %v1020_v17 = vld [vmem:[#allocation2 + $0x78] sm:$0xff]  ;;  %v1346_v33 = vld [vmem:[#allocation14] sm:$0x3] (!%p1658_p12) }
 0x263   : > { %v1025_v42 = vpack.c.bf16 %v999_v35, %v997_v34  ;;  %v1001_v43 = vmax.f32 %v985_v37, 0.0  ;;  %v1003_v44 = vmax.f32 %v987_v38, 0.0  ;;  %v1351_v35 = vrot.slane (!%p1658_p12), %v1346_v33, %v2613_v13 }
 0x264   : > { %v1028_v45 = vpack.c.bf16 %v1004_v40, %v1002_v39  ;;  %v1355_v37 = vrot.slane (!%p1658_p12), %v1346_v33, %v2608_v11 }
 0x265   : > { %v1027_v47 = vpack.c.bf16 %v1003_v44, %v1001_v43 }
 0x269   : > { %1264 = vmatmul.mubr.bf16.gmra.mrb[4].mxu1 %v1023_v19 }
 0x26a   : > { %1273 = vmatprep.mubr.bf16.mxu1 %v1026_v18 }
 0x271   : > { %1274 = vmatmul.mubr.bf16.gmra.mrb[8].mxu1 %v1025_v42 }
 0x272   : > { %1283 = vmatprep.mubr.bf16.mxu1 %v1028_v45 }
 0x279   : > { %1284 = vmatmul.mubr.bf16.gmra.mrb[12].mxu1 %v1027_v47 }
 0x334   : > { %v1255_v10 = vpop.f32.mrb[0].mxu1 }
 0x335   : > { %v1294_v49 = vadd.f32 %v1255_v10, %v1005_v46  ;;  %v1257_v50 = vpop.f32.mrb[1].mxu1 }
 0x336   : > { %v1295_v53 = vadd.f32 %v1257_v50, %v1006_v16  ;;  %v1259_v55 = vpop.f32.mrb[2].mxu1 }
 0x337   : > { %1310 = vst [vmem:[#allocation2] sm:$0xff] %v1294_v49  ;;  %v1296_v56 = vadd.f32 %v1259_v55, %v1007_v48  ;;  %v1261_v29 = vpop.f32.mrb[3].mxu1 }
 0x338   : > { %1311 = vst [vmem:[#allocation2 + $0x8] sm:$0xff] %v1295_v53  ;;  %v1297_v31 = vadd.f32 %v1261_v29, %v1008_v51 }
 0x339   : > { %1312 = vst [vmem:[#allocation2 + $0x10] sm:$0xff] %v1296_v56 }
 0x33a   : > { %1313 = vst [vmem:[#allocation2 + $0x18] sm:$0xff] %v1297_v31 }
 0x33c   : > { %v1265_v58 = vpop.f32.mrb[4].mxu1 }
 0x33d   : > { %v1298_v54 = vadd.f32 %v1265_v58, %v1009_v57  ;;  %v1267_v63 = vpop.f32.mrb[5].mxu1 }
 0x33e   : > { %v1299_v59 = vadd.f32 %v1267_v63, %v1010_v41  ;;  %v1269_v14 = vpop.f32.mrb[6].mxu1  ;;  %v1330_v32 = vld [vmem:[#allocation2] sm:$0xff] (!%p1658_p12) }
 0x33f   : > { %1314 = vst [vmem:[#allocation2 + $0x20] sm:$0xff] %v1298_v54  ;;  %v1300_v9 = vadd.f32 %v1269_v14, %v1011_v36  ;;  %v1271_v60 = vpop.f32.mrb[7].mxu1  ;;  %v1331_v34 = vld [vmem:[#allocation2 + $0x8] sm:$0xff] (!%p1658_p12)  ;;  %v1358_v44 = vadd.f32 (!%p1658_p12), %v1351_v35, %v1330_v32 }
 0x340   : > { %1315 = vst [vmem:[#allocation2 + $0x28] sm:$0xff] %v1299_v59  ;;  %v1301_v24 = vadd.f32 %v1271_v60, %v1012_v52  ;;  %v1332_v38 = vld [vmem:[#allocation2 + $0x10] sm:$0xff] (!%p1658_p12)  ;;  %v1359_v45 = vadd.f32 (!%p1658_p12), %v1355_v37, %v1331_v34 }
 0x341   : > { %1316 = vst [vmem:[#allocation2 + $0x30] sm:$0xff] %v1300_v9  ;;  %v1333_v18 = vld [vmem:[#allocation2 + $0x18] sm:$0xff] (!%p1658_p12)  ;;  %v1360_v47 = vadd.f32 (!%p1658_p12), %v1351_v35, %v1332_v38  ;;  %1374 = vst [vmem:[#allocation15] sm:$0xff] (!%p1658_p12), %v1358_v44 }
 0x342   : > { %1317 = vst [vmem:[#allocation2 + $0x38] sm:$0xff] %v1301_v24  ;;  %v1361_v46 = vadd.f32 (!%p1658_p12), %v1355_v37, %v1333_v18  ;;  %1375 = vst [vmem:[#allocation15 + $0x8] sm:$0xff] (!%p1658_p12), %v1359_v45 }
 0x343   : > { %1376 = vst [vmem:[#allocation15 + $0x10] sm:$0xff] (!%p1658_p12), %v1360_v47 }
 0x344   : > { %v1275_v0 = vpop.f32.mrb[8].mxu1  ;;  %1377 = vst [vmem:[#allocation15 + $0x18] sm:$0xff] (!%p1658_p12), %v1361_v46 }
 0x345   : > { %v1302_v2 = vadd.f32 %v1275_v0, %v1013_v61  ;;  %v1277_v22 = vpop.f32.mrb[9].mxu1 }
 0x346   : > { %v1303_v20 = vadd.f32 %v1277_v22, %v1014_v62  ;;  %v1279_v4 = vpop.f32.mrb[10].mxu1  ;;  %v1334_v39 = vld [vmem:[#allocation2 + $0x20] sm:$0xff] (!%p1658_p12) }
 0x347   : > { %1318 = vst [vmem:[#allocation2 + $0x40] sm:$0xff] %v1302_v2  ;;  %v1304_v5 = vadd.f32 %v1279_v4, %v1015_v1  ;;  %v1281_v6 = vpop.f32.mrb[11].mxu1  ;;  %v1335_v40 = vld [vmem:[#allocation2 + $0x28] sm:$0xff] (!%p1658_p12)  ;;  %v1362_v49 = vadd.f32 (!%p1658_p12), %v1351_v35, %v1334_v39 }
 0x348   : > { %1319 = vst [vmem:[#allocation2 + $0x48] sm:$0xff] %v1303_v20  ;;  %v1305_v7 = vadd.f32 %v1281_v6, %v1016_v3  ;;  %v1336_v42 = vld [vmem:[#allocation2 + $0x30] sm:$0xff] (!%p1658_p12)  ;;  %v1363_v50 = vadd.f32 (!%p1658_p12), %v1355_v37, %v1335_v40 }
 0x349   : > { %1320 = vst [vmem:[#allocation2 + $0x50] sm:$0xff] %v1304_v5  ;;  %v1337_v43 = vld [vmem:[#allocation2 + $0x38] sm:$0xff] (!%p1658_p12)  ;;  %v1364_v51 = vadd.f32 (!%p1658_p12), %v1351_v35, %v1336_v42  ;;  %1378 = vst [vmem:[#allocation15 + $0x20] sm:$0xff] (!%p1658_p12), %v1362_v49 }
 0x34a   : > { %1321 = vst [vmem:[#allocation2 + $0x58] sm:$0xff] %v1305_v7  ;;  %v1365_v53 = vadd.f32 (!%p1658_p12), %v1355_v37, %v1337_v43  ;;  %1379 = vst [vmem:[#allocation15 + $0x28] sm:$0xff] (!%p1658_p12), %v1363_v50 }
 0x34b   : > { %1380 = vst [vmem:[#allocation15 + $0x30] sm:$0xff] (!%p1658_p12), %v1364_v51 }
 0x34c   : > { %v1285_v12 = vpop.f32.mrb[12].mxu1  ;;  %1329 = sbr.rel (%p1658_p12) target bundleno = 861 (0x35d), region = 84  ;;  %1381 = vst [vmem:[#allocation15 + $0x38] sm:$0xff] (!%p1658_p12), %v1365_v53 }
 0x34d   : > { %v1306_v15 = vadd.f32 %v1285_v12, %v1017_v8  ;;  %v1287_v27 = vpop.f32.mrb[13].mxu1 }
 0x34e   : > { %v1307_v19 = vadd.f32 %v1287_v27, %v1018_v23  ;;  %v1289_v25 = vpop.f32.mrb[14].mxu1  ;;  %v1338_v16 = vld [vmem:[#allocation2 + $0x40] sm:$0xff] (!%p1658_p12) }
 0x34f   : > { %1322 = vst [vmem:[#allocation2 + $0x60] sm:$0xff] %v1306_v15  ;;  %v1308_v26 = vadd.f32 %v1289_v25, %v1019_v21  ;;  %v1291_v28 = vpop.f32.mrb[15].mxu1  ;;  %v1339_v10 = vld [vmem:[#allocation2 + $0x48] sm:$0xff] (!%p1658_p12)  ;;  %v1366_v56 = vadd.f32 (!%p1658_p12), %v1351_v35, %v1338_v16 }
 0x350   : > { %1323 = vst [vmem:[#allocation2 + $0x68] sm:$0xff] %v1307_v19  ;;  %v1309_v30 = vadd.f32 %v1291_v28, %v1020_v17  ;;  %v1340_v48 = vld [vmem:[#allocation2 + $0x50] sm:$0xff] (!%p1658_p12)  ;;  %v1367_v29 = vadd.f32 (!%p1658_p12), %v1355_v37, %v1339_v10 }
 0x351   : > { %1324 = vst [vmem:[#allocation2 + $0x70] sm:$0xff] %v1308_v26  ;;  %v1341_v13 = vld [vmem:[#allocation2 + $0x58] sm:$0xff] (!%p1658_p12)  ;;  %v1368_v31 = vadd.f32 (!%p1658_p12), %v1351_v35, %v1340_v48  ;;  %1382 = vst [vmem:[#allocation15 + $0x40] sm:$0xff] (!%p1658_p12), %v1366_v56 }
 0x352   : > { %1325 = vst [vmem:[#allocation2 + $0x78] sm:$0xff] %v1309_v30  ;;  %v1369_v57 = vadd.f32 (!%p1658_p12), %v1355_v37, %v1341_v13  ;;  %1383 = vst [vmem:[#allocation15 + $0x48] sm:$0xff] (!%p1658_p12), %v1367_v29 }
 0x353   : > { %1384 = vst [vmem:[#allocation15 + $0x50] sm:$0xff] %v1368_v31 }
 0x354   : > { %1385 = vst [vmem:[#allocation15 + $0x58] sm:$0xff] %v1369_v57 }
 0x356   : > { %v1342_v55 = vld [vmem:[#allocation2 + $0x60] sm:$0xff] }
 0x357   : > { %v1343_v11 = vld [vmem:[#allocation2 + $0x68] sm:$0xff]  ;;  %v1370_v36 = vadd.f32 %v1351_v35, %v1342_v55 }
 0x358   : > { %v1344_v41 = vld [vmem:[#allocation2 + $0x70] sm:$0xff]  ;;  %v1371_v54 = vadd.f32 %v1355_v37, %v1343_v11 }
 0x359   : > { %v1345_v58 = vld [vmem:[#allocation2 + $0x78] sm:$0xff]  ;;  %v1372_v63 = vadd.f32 %v1351_v35, %v1344_v41  ;;  %1386 = vst [vmem:[#allocation15 + $0x60] sm:$0xff] %v1370_v36 }
 0x35a   : > { %v1373_v52 = vadd.f32 %v1355_v37, %v1345_v58  ;;  %1387 = vst [vmem:[#allocation15 + $0x68] sm:$0xff] %v1371_v54 }
 0x35b   : > { %1388 = vst [vmem:[#allocation15 + $0x70] sm:$0xff] %v1372_v63 }
 0x35c   : > { %1389 = vst [vmem:[#allocation15 + $0x78] sm:$0xff] %v1373_v52 }
 0x35d PF: > { %p1719_p10 = scmp.eq.s32.totalorder %s2237_s28, 1  ;;  %s2175_s11 = smov [#allocation15]  }
 0x35e   : > { %s1396_s30 = sshll.u32 %s2175_s11, 4  ;;  %s1397_s30 = int_to_ptr.vmem [resolvable:$true] %s1396_s30 }
 0x35f   : > { %s2081_s27 = scalar_lea.vmem %s1397_s30, 2048  ;;  %p2088_p6 = scmp.lt.s32.totalorder %s1397_s30, %s1397_s30 }
 0x360   : > { %p2082_p3 = scmp.ne.s32.totalorder %s1397_s30, %s2081_s27  ;;  %p2089_p4 = scmp.lt.s32.totalorder %s2081_s27, %s2081_s27 }
 0x362   : > { %p2083_p7 = pnand %p2082_p3, %p1719_p10  ;;  %p2090_p9 = por %p2089_p4, %p2088_p6 }
 0x364   : > { %p2084_p1 = pneg %p2083_p7 }
 0x366   : > { %p2091_p2 = pnand %p2090_p9, %p2084_p1 }
 0x368   : > { %2094 = shalt.err (!%p2091_p2)
}
 0x369   : > { %s2095_s24 = scalar_lea.hbm %s2772_s7, 2048 }
 0x36a   : > { %p2096_p0 = scmp.ne.s32.totalorder %s2772_s7, %s2095_s24  ;;  %p2101_p11 = scmp.lt.u32.totalorder %s2095_s24, %s2772_s7 }
 0x36c   : > { %p2097_p8 = pnand %p2096_p0, %p1719_p10 }
 0x36e   : > { %p2098_p13 = pneg %p2097_p8 }
 0x370   : > { %p2103_p5 = pnand %p2101_p11, %p2098_p13 }
 0x372   : > { %2106 = shalt.err (!%p2103_p5)
}
 0x373   : > { %s2176_s21 = smov 256   ;;  %s2177_s16 = smov 16  }
 0x374   : > { %1688 = dma.vmem_to_hbm [thread:$0]  (%p1719_p10), %s1397_s30, 2048, %s2772_s7, [#allocation5], %s2176_s21, %s2176_s21, %s2177_s16  }
 0x375   : > { %2144 = dma.done.wait (%p1719_p10), [#allocation5], 2048  }
 0x376   : > { %2146 = vsyncadd (%p1719_p10), [#allocation5], 4294965248 }
 0x377 PF: > { %s2818_s27 = sld [smem:[#allocation23_spill]]  ;;  %s2819_s15 = sld [smem:[#allocation22_spill]] }
 0x378   : > { %s2820_s26 = sld [smem:[#allocation24_spill]]  ;;  %s2821_s24 = smov %s2153_s25 }
 0x37d   : > { %p25_p12 = scmp.ge.s32.totalorder %s2818_s27, 4   ;;  %s2822_s25 = smov %s2819_s15 }
 0x37f   :  { %27 = sbr.rel (!%p25_p12) target bundleno = 12 (0xc), region = 150 }
 0x386   :  { %1412 = vsyncpa [#allocation4], 1 }
 0x387   :  { %1414 = vsyncpa [#allocation4 + $0x1], 1 }
 0x388   :  { %1415 = vsyncpa [#allocation7], 1 }
 0x389   :  { %1417 = vsyncpa [#allocation7 + $0x1], 1 }
 0x38a   :  { %1418 = vsyncpa [#allocation10], 1 }
 0x38b   :  { %1420 = vsyncpa [#allocation10 + $0x1], 1 }
 0x38c   :  { %1421 = vsyncpa [#allocation13], 1 }
 0x38d   :  { %1423 = vsyncpa [#allocation13 + $0x1], 1 }
 0x38e   :  { %1424 = vsyncpa [#allocation5], 1 }
 0x38f   :  { %1426 = vsyncpa [#allocation5 + $0x1], 1 }

</bundles_post_ra>
